<compile_context>
chip_gen: v6e
topology: v6e:2x2x1
jax: 0.10.0
libtpu: 0.0.40
codegen_flags: <defaults>
</compile_context>

<pallas_src>
import functools

import jax
import jax.numpy as jnp
from jax.experimental import pallas as pl
from jax.experimental.pallas import tpu as pltpu


def _round_up(x: int, m: int) -> int:
    return ((x + m - 1) // m) * m


def _embed_kernel(ids_ref, pids_ref,          # scalar prefetch (SMEM), (B, S_pad) int32
                  word_hbm,                   # (vocab, d) stays in HBM (pl.ANY)
                  pos_ref,                    # (max_pos, d) resident in VMEM
                  o_ref,                      # (block_s, d) output tile (batch dim squeezed)
                  wbuf, wsem,                 # (2, block_s, d) VMEM + DMA sem (2,)
                  *scratch,                   # (prow_buf,) only in the gather-pos fallback
                  block_s, contiguous, unroll):
    b = pl.program_id(0)
    j = pl.program_id(1)
    nj = pl.num_programs(1)
    nchunks = block_s // unroll

    def issue_word_gather(block_idx, slot):
        base = block_idx * block_s

        @pl.loop(0, nchunks)
        def _(c):
            for u in range(unroll):              # bounded unroll (8)
                t = c * unroll + u
                tok = ids_ref[b, base + t]
                pltpu.make_async_copy(
                    word_hbm.at[pl.ds(tok, 1), :],
                    wbuf.at[slot, pl.ds(t, 1), :],
                    wsem.at[slot],
                ).start()

    # Prime: first seq-block of this batch row (runs once per batch row, so it
    # is correct even when the batch axis is sharded across TensorCores).
    @pl.when(j == 0)
    def _():
        issue_word_gather(0, 0)

    # Prefetch next seq-block's word rows into the other slot (cross-step DB).
    @pl.when(j + 1 < nj)
    def _():
        issue_word_gather(j + 1, (j + 1) % 2)

    slot = j % 2

    # Wait for this block's word-row DMAs.  The descriptor here only needs the
    # semaphore + a size-matching ref (issue happened in the previous grid
    # step, so the handle cannot be reused) -- same pattern as the reference
    # paged-attention kernel.
    @pl.loop(0, nchunks)
    def _(c):
        for u in range(unroll):
            t = c * unroll + u
            pltpu.make_async_copy(
                word_hbm.at[pl.ds(0, 1), :],
                wbuf.at[slot, pl.ds(t, 1), :],
                wsem.at[slot],
            ).wait()

    base = j * block_s
    if contiguous:
        # Default position_ids == arange: the block's positions are exactly
        # [base, base + block_s) -> one contiguous in-VMEM slice, no gather.
        pstart = pl.multiple_of(base, 8)
        pos_rows = pos_ref[pl.ds(pstart, block_s), :]
    else:
        # Arbitrary position_ids: per-row gather from the resident VMEM table.
        prow_buf, = scratch

        @pl.loop(0, nchunks)
        def _(c):
            for u in range(unroll):
                t = c * unroll + u
                pid = pids_ref[b, base + t]
                prow_buf[pl.ds(t, 1), :] = pos_ref[pl.ds(pid, 1), :]

        pos_rows = prow_buf[...]

    # embeddings = word_emb[input_ids] + pos_emb[position_ids]
    o_ref[...] = (wbuf[slot] + pos_rows).astype(o_ref.dtype)


@functools.partial(jax.jit, static_argnames=("block_s",))
def gpt2_embeddings(input_ids, word_table, pos_table, position_ids=None, *,
                    block_s=128):
    """input_ids: (batch, seqlen) int -> (batch, seqlen, embed_dim).

    word_table: (vocab_size, embed_dim); pos_table: (max_position_embeddings, embed_dim).
    """
    # TODO(synk): project_in (word_embed_proj_dim != None, OPT-350m path) not implemented.
    # TODO(synk): max_position_embeddings <= 0 (no position embeddings) path not implemented.
    batch, seqlen = input_ids.shape
    vocab, d = word_table.shape
    max_pos, d2 = pos_table.shape
    assert d == d2, "word/position embedding dims must match"

    itemsize = jnp.dtype(word_table.dtype).itemsize
    sub = {4: 8, 2: 16, 1: 32}.get(itemsize, 8)      # sublane minimum per dtype

    # Effective seq-block: multiple of `sub`, no larger than (rounded) seqlen.
    bs = min(_round_up(block_s, sub), _round_up(seqlen, sub))
    unroll = 8                                        # bs is always a multiple of 8
    seqlen_pad = _round_up(seqlen, bs)
    n_blocks = seqlen_pad // bs

    # Contiguous-position fast path: default arange positions and aligned blocks.
    contiguous = (position_ids is None) and (seqlen % bs == 0)
    if position_ids is None:
        assert seqlen <= max_pos, "seqlen exceeds max_position_embeddings"
        pids = jnp.broadcast_to(jnp.arange(seqlen, dtype=jnp.int32), (batch, seqlen))
    else:
        pids = position_ids.astype(jnp.int32)
    ids = input_ids.astype(jnp.int32)

    if seqlen_pad != seqlen:
        pad = seqlen_pad - seqlen
        ids = jnp.pad(ids, ((0, 0), (0, pad)))    # padded tokens read row 0; sliced off
        pids = jnp.pad(pids, ((0, 0), (0, pad)))

    kernel = functools.partial(_embed_kernel, block_s=bs, contiguous=contiguous,
                               unroll=unroll)

    scratch = [
        pltpu.VMEM((2, bs, d), word_table.dtype),     # double-buffered word rows
        pltpu.SemaphoreType.DMA((2,)),                # one sem per slot
    ]
    if not contiguous:
        scratch.append(pltpu.VMEM((bs, d), pos_table.dtype))   # gathered pos rows

    out = pl.pallas_call(
        kernel,
        out_shape=jax.ShapeDtypeStruct((batch, seqlen_pad, d), word_table.dtype),
        grid_spec=pltpu.PrefetchScalarGridSpec(
            num_scalar_prefetch=2,                    # ids, position_ids -> SMEM
            grid=(batch, n_blocks),
            in_specs=[
                pl.BlockSpec(memory_space=pl.ANY),    # word table stays in HBM
                pl.BlockSpec((max_pos, d),            # pos table resident in VMEM
                             lambda b, j, ids, pids: (0, 0)),
            ],
            out_specs=pl.BlockSpec((None, bs, d),
                                   lambda b, j, ids, pids: (b, j, 0)),
            scratch_shapes=scratch,
        ),
        compiler_params=pltpu.CompilerParams(
            # batch axis shards across TensorCores (v7x); seq axis carries the
            # double-buffer state so it must stay "arbitrary".
            dimension_semantics=("parallel", "arbitrary")),
        cost_estimate=pl.CostEstimate(
            flops=batch * seqlen_pad * d,             # the elementwise add
            transcendentals=0,
            bytes_accessed=(2 * batch * seqlen_pad * d + max_pos * d) * itemsize),
    )(ids, pids, word_table, pos_table)

    if seqlen_pad != seqlen:
        out = out[:, :seqlen]
    return out


def gpt2_embeddings_reference(input_ids, word_table, pos_table, position_ids=None):
    batch, seqlen = input_ids.shape
    if position_ids is None:
        position_ids = jnp.broadcast_to(
            jnp.arange(seqlen, dtype=jnp.int32), (batch, seqlen))
    return (jnp.take(word_table, input_ids, axis=0)
            + jnp.take(pos_table, position_ids, axis=0))


if __name__ == "__main__":
    key = jax.random.PRNGKey(0)
    # seqlen = 2 * block_s so the cross-step prefetch path actually runs.
    batch, seqlen = 2, 256
    vocab_size, embed_dim, max_pos = 512, 256, 256

    k_ids, k_w, k_p = jax.random.split(key, 3)
    input_ids = jax.random.randint(k_ids, (batch, seqlen), 0, vocab_size,
                                   dtype=jnp.int32)
    word_table = jax.random.normal(k_w, (vocab_size, embed_dim), jnp.float32) * 0.02
    pos_table = jax.random.normal(k_p, (max_pos, embed_dim), jnp.float32) * 0.02

    y = gpt2_embeddings(input_ids, word_table, pos_table)
    y = jax.block_until_ready(y)

    y_ref = gpt2_embeddings_reference(input_ids, word_table, pos_table)
    assert y.shape == (batch, seqlen, embed_dim)
    assert jnp.allclose(y, y_ref, atol=1e-6, rtol=1e-6), "mismatch vs reference"

    print("KERNEL_OK")
</pallas_src>

<mosaic_0001>
module attributes {stable_mosaic.version = 11 : i64} {
  func.func @_embed_kernel(%arg0: i32, %arg1: i32, %arg2: memref<2x256xi32, #tpu.memory_space<smem>>, %arg3: memref<2x256xi32, #tpu.memory_space<smem>>, %arg4: memref<512x256xf32, #tpu.memory_space<any>>, %arg5: memref<256x256xf32, #tpu.memory_space<vmem>>, %arg6: memref<1x128x256xf32, #tpu.memory_space<vmem>>, %arg7: memref<2x128x256xf32, #tpu.memory_space<vmem>>, %arg8: memref<2x!tpu.dma_semaphore, #tpu.memory_space<semaphore_mem>>) attributes {dimension_semantics = [#tpu.dimension_semantics<parallel>, #tpu.dimension_semantics<arbitrary>], iteration_bounds = array<i64: 2, 2>, scalar_prefetch = 2 : i64, scratch_operands = 2 : i64, tpu.core_type = #tpu.core_type<tc>, window_params = [{}, {pipeline_mode = #tpu.pipeline_mode<synchronous>, transform_indices = @transform_1, window_bounds = array<i64: 256, 256>}, {transform_indices = @transform_2, window_bounds = array<i64: 1, 128, 256>}]} {
    %c0_i32 = arith.constant 0 : i32
    %0 = arith.cmpi eq, %arg1, %c0_i32 : i32
    %1 = arith.extui %0 : i1 to i32
    %c0_i32_0 = arith.constant 0 : i32
    %2 = arith.cmpi ne, %1, %c0_i32_0 : i32
    scf.if %2 {
      %c0_i32_16 = arith.constant 0 : i32
      %c16_i32_17 = arith.constant 16 : i32
      %29 = arith.addi %c0_i32_16, %c16_i32_17 : i32
      %c1_i32_18 = arith.constant 1 : i32
      scf.for %arg9 = %c0_i32_16 to %29 step %c1_i32_18  : i32 {
        %c1_i32_20 = arith.constant 1 : i32
        %30 = arith.muli %arg9, %c1_i32_20 : i32
        %c0_i32_21 = arith.constant 0 : i32
        %31 = arith.addi %c0_i32_21, %30 : i32
        %c8_i32 = arith.constant 8 : i32
        %32 = arith.muli %31, %c8_i32 : i32
        %c0_i32_22 = arith.constant 0 : i32
        %33 = arith.addi %32, %c0_i32_22 : i32
        %c0_i32_23 = arith.constant 0 : i32
        %34 = arith.addi %c0_i32_23, %33 : i32
        %35 = arith.index_cast %arg0 : i32 to index
        %36 = arith.index_cast %34 : i32 to index
        %37 = memref.load %arg2[%35, %36] : memref<2x256xi32, #tpu.memory_space<smem>>
        %c0_i32_24 = arith.constant 0 : i32
        %c0_i32_25 = arith.constant 0 : i32
        %c0_i32_26 = arith.constant 0 : i32
        %38 = tpu.memref_slice %arg4[%37, %c0_i32_26] : memref<512x256xf32, #tpu.memory_space<any>> -> memref<1x256xf32, #tpu.memory_space<any>>
        %c0_i32_27 = arith.constant 0 : i32
        %39 = tpu.memref_slice %arg7[%c0_i32_24, %33, %c0_i32_27] : memref<2x128x256xf32, #tpu.memory_space<vmem>> -> memref<1x1x256xf32, #tpu.memory_space<vmem>>
        %40 = tpu.memref_squeeze %39 : memref<1x1x256xf32, #tpu.memory_space<vmem>> -> memref<1x256xf32, #tpu.memory_space<vmem>>
        %41 = tpu.memref_slice %arg8[%c0_i32_25] : memref<2x!tpu.dma_semaphore, #tpu.memory_space<semaphore_mem>> -> memref<1x!tpu.dma_semaphore, #tpu.memory_space<semaphore_mem>>
        %42 = tpu.memref_squeeze %41 : memref<1x!tpu.dma_semaphore, #tpu.memory_space<semaphore_mem>> -> memref<!tpu.dma_semaphore, #tpu.memory_space<semaphore_mem>>
        tpu.enqueue_dma source(%38 : memref<1x256xf32, #tpu.memory_space<any>>) target(%40 : memref<1x256xf32, #tpu.memory_space<vmem>>) target_semaphore(%42 : memref<!tpu.dma_semaphore, #tpu.memory_space<semaphore_mem>>)
        %c8_i32_28 = arith.constant 8 : i32
        %43 = arith.muli %31, %c8_i32_28 : i32
        %c1_i32_29 = arith.constant 1 : i32
        %44 = arith.addi %43, %c1_i32_29 : i32
        %c0_i32_30 = arith.constant 0 : i32
        %45 = arith.addi %c0_i32_30, %44 : i32
        %46 = arith.index_cast %arg0 : i32 to index
        %47 = arith.index_cast %45 : i32 to index
        %48 = memref.load %arg2[%46, %47] : memref<2x256xi32, #tpu.memory_space<smem>>
        %c0_i32_31 = arith.constant 0 : i32
        %c0_i32_32 = arith.constant 0 : i32
        %c0_i32_33 = arith.constant 0 : i32
        %49 = tpu.memref_slice %arg4[%48, %c0_i32_33] : memref<512x256xf32, #tpu.memory_space<any>> -> memref<1x256xf32, #tpu.memory_space<any>>
        %c0_i32_34 = arith.constant 0 : i32
        %50 = tpu.memref_slice %arg7[%c0_i32_31, %44, %c0_i32_34] : memref<2x128x256xf32, #tpu.memory_space<vmem>> -> memref<1x1x256xf32, #tpu.memory_space<vmem>>
        %51 = tpu.memref_squeeze %50 : memref<1x1x256xf32, #tpu.memory_space<vmem>> -> memref<1x256xf32, #tpu.memory_space<vmem>>
        %52 = tpu.memref_slice %arg8[%c0_i32_32] : memref<2x!tpu.dma_semaphore, #tpu.memory_space<semaphore_mem>> -> memref<1x!tpu.dma_semaphore, #tpu.memory_space<semaphore_mem>>
        %53 = tpu.memref_squeeze %52 : memref<1x!tpu.dma_semaphore, #tpu.memory_space<semaphore_mem>> -> memref<!tpu.dma_semaphore, #tpu.memory_space<semaphore_mem>>
        tpu.enqueue_dma source(%49 : memref<1x256xf32, #tpu.memory_space<any>>) target(%51 : memref<1x256xf32, #tpu.memory_space<vmem>>) target_semaphore(%53 : memref<!tpu.dma_semaphore, #tpu.memory_space<semaphore_mem>>)
        %c8_i32_35 = arith.constant 8 : i32
        %54 = arith.muli %31, %c8_i32_35 : i32
        %c2_i32_36 = arith.constant 2 : i32
        %55 = arith.addi %54, %c2_i32_36 : i32
        %c0_i32_37 = arith.constant 0 : i32
        %56 = arith.addi %c0_i32_37, %55 : i32
        %57 = arith.index_cast %arg0 : i32 to index
        %58 = arith.index_cast %56 : i32 to index
        %59 = memref.load %arg2[%57, %58] : memref<2x256xi32, #tpu.memory_space<smem>>
        %c0_i32_38 = arith.constant 0 : i32
        %c0_i32_39 = arith.constant 0 : i32
        %c0_i32_40 = arith.constant 0 : i32
        %60 = tpu.memref_slice %arg4[%59, %c0_i32_40] : memref<512x256xf32, #tpu.memory_space<any>> -> memref<1x256xf32, #tpu.memory_space<any>>
        %c0_i32_41 = arith.constant 0 : i32
        %61 = tpu.memref_slice %arg7[%c0_i32_38, %55, %c0_i32_41] : memref<2x128x256xf32, #tpu.memory_space<vmem>> -> memref<1x1x256xf32, #tpu.memory_space<vmem>>
        %62 = tpu.memref_squeeze %61 : memref<1x1x256xf32, #tpu.memory_space<vmem>> -> memref<1x256xf32, #tpu.memory_space<vmem>>
        %63 = tpu.memref_slice %arg8[%c0_i32_39] : memref<2x!tpu.dma_semaphore, #tpu.memory_space<semaphore_mem>> -> memref<1x!tpu.dma_semaphore, #tpu.memory_space<semaphore_mem>>
        %64 = tpu.memref_squeeze %63 : memref<1x!tpu.dma_semaphore, #tpu.memory_space<semaphore_mem>> -> memref<!tpu.dma_semaphore, #tpu.memory_space<semaphore_mem>>
        tpu.enqueue_dma source(%60 : memref<1x256xf32, #tpu.memory_space<any>>) target(%62 : memref<1x256xf32, #tpu.memory_space<vmem>>) target_semaphore(%64 : memref<!tpu.dma_semaphore, #tpu.memory_space<semaphore_mem>>)
        %c8_i32_42 = arith.constant 8 : i32
        %65 = arith.muli %31, %c8_i32_42 : i32
        %c3_i32 = arith.constant 3 : i32
        %66 = arith.addi %65, %c3_i32 : i32
        %c0_i32_43 = arith.constant 0 : i32
        %67 = arith.addi %c0_i32_43, %66 : i32
        %68 = arith.index_cast %arg0 : i32 to index
        %69 = arith.index_cast %67 : i32 to index
        %70 = memref.load %arg2[%68, %69] : memref<2x256xi32, #tpu.memory_space<smem>>
        %c0_i32_44 = arith.constant 0 : i32
        %c0_i32_45 = arith.constant 0 : i32
        %c0_i32_46 = arith.constant 0 : i32
        %71 = tpu.memref_slice %arg4[%70, %c0_i32_46] : memref<512x256xf32, #tpu.memory_space<any>> -> memref<1x256xf32, #tpu.memory_space<any>>
        %c0_i32_47 = arith.constant 0 : i32
        %72 = tpu.memref_slice %arg7[%c0_i32_44, %66, %c0_i32_47] : memref<2x128x256xf32, #tpu.memory_space<vmem>> -> memref<1x1x256xf32, #tpu.memory_space<vmem>>
        %73 = tpu.memref_squeeze %72 : memref<1x1x256xf32, #tpu.memory_space<vmem>> -> memref<1x256xf32, #tpu.memory_space<vmem>>
        %74 = tpu.memref_slice %arg8[%c0_i32_45] : memref<2x!tpu.dma_semaphore, #tpu.memory_space<semaphore_mem>> -> memref<1x!tpu.dma_semaphore, #tpu.memory_space<semaphore_mem>>
        %75 = tpu.memref_squeeze %74 : memref<1x!tpu.dma_semaphore, #tpu.memory_space<semaphore_mem>> -> memref<!tpu.dma_semaphore, #tpu.memory_space<semaphore_mem>>
        tpu.enqueue_dma source(%71 : memref<1x256xf32, #tpu.memory_space<any>>) target(%73 : memref<1x256xf32, #tpu.memory_space<vmem>>) target_semaphore(%75 : memref<!tpu.dma_semaphore, #tpu.memory_space<semaphore_mem>>)
        %c8_i32_48 = arith.constant 8 : i32
        %76 = arith.muli %31, %c8_i32_48 : i32
        %c4_i32 = arith.constant 4 : i32
        %77 = arith.addi %76, %c4_i32 : i32
        %c0_i32_49 = arith.constant 0 : i32
        %78 = arith.addi %c0_i32_49, %77 : i32
        %79 = arith.index_cast %arg0 : i32 to index
        %80 = arith.index_cast %78 : i32 to index
        %81 = memref.load %arg2[%79, %80] : memref<2x256xi32, #tpu.memory_space<smem>>
        %c0_i32_50 = arith.constant 0 : i32
        %c0_i32_51 = arith.constant 0 : i32
        %c0_i32_52 = arith.constant 0 : i32
        %82 = tpu.memref_slice %arg4[%81, %c0_i32_52] : memref<512x256xf32, #tpu.memory_space<any>> -> memref<1x256xf32, #tpu.memory_space<any>>
        %c0_i32_53 = arith.constant 0 : i32
        %83 = tpu.memref_slice %arg7[%c0_i32_50, %77, %c0_i32_53] : memref<2x128x256xf32, #tpu.memory_space<vmem>> -> memref<1x1x256xf32, #tpu.memory_space<vmem>>
        %84 = tpu.memref_squeeze %83 : memref<1x1x256xf32, #tpu.memory_space<vmem>> -> memref<1x256xf32, #tpu.memory_space<vmem>>
        %85 = tpu.memref_slice %arg8[%c0_i32_51] : memref<2x!tpu.dma_semaphore, #tpu.memory_space<semaphore_mem>> -> memref<1x!tpu.dma_semaphore, #tpu.memory_space<semaphore_mem>>
        %86 = tpu.memref_squeeze %85 : memref<1x!tpu.dma_semaphore, #tpu.memory_space<semaphore_mem>> -> memref<!tpu.dma_semaphore, #tpu.memory_space<semaphore_mem>>
        tpu.enqueue_dma source(%82 : memref<1x256xf32, #tpu.memory_space<any>>) target(%84 : memref<1x256xf32, #tpu.memory_space<vmem>>) target_semaphore(%86 : memref<!tpu.dma_semaphore, #tpu.memory_space<semaphore_mem>>)
        %c8_i32_54 = arith.constant 8 : i32
        %87 = arith.muli %31, %c8_i32_54 : i32
        %c5_i32 = arith.constant 5 : i32
        %88 = arith.addi %87, %c5_i32 : i32
        %c0_i32_55 = arith.constant 0 : i32
        %89 = arith.addi %c0_i32_55, %88 : i32
        %90 = arith.index_cast %arg0 : i32 to index
        %91 = arith.index_cast %89 : i32 to index
        %92 = memref.load %arg2[%90, %91] : memref<2x256xi32, #tpu.memory_space<smem>>
        %c0_i32_56 = arith.constant 0 : i32
        %c0_i32_57 = arith.constant 0 : i32
        %c0_i32_58 = arith.constant 0 : i32
        %93 = tpu.memref_slice %arg4[%92, %c0_i32_58] : memref<512x256xf32, #tpu.memory_space<any>> -> memref<1x256xf32, #tpu.memory_space<any>>
        %c0_i32_59 = arith.constant 0 : i32
        %94 = tpu.memref_slice %arg7[%c0_i32_56, %88, %c0_i32_59] : memref<2x128x256xf32, #tpu.memory_space<vmem>> -> memref<1x1x256xf32, #tpu.memory_space<vmem>>
        %95 = tpu.memref_squeeze %94 : memref<1x1x256xf32, #tpu.memory_space<vmem>> -> memref<1x256xf32, #tpu.memory_space<vmem>>
        %96 = tpu.memref_slice %arg8[%c0_i32_57] : memref<2x!tpu.dma_semaphore, #tpu.memory_space<semaphore_mem>> -> memref<1x!tpu.dma_semaphore, #tpu.memory_space<semaphore_mem>>
        %97 = tpu.memref_squeeze %96 : memref<1x!tpu.dma_semaphore, #tpu.memory_space<semaphore_mem>> -> memref<!tpu.dma_semaphore, #tpu.memory_space<semaphore_mem>>
        tpu.enqueue_dma source(%93 : memref<1x256xf32, #tpu.memory_space<any>>) target(%95 : memref<1x256xf32, #tpu.memory_space<vmem>>) target_semaphore(%97 : memref<!tpu.dma_semaphore, #tpu.memory_space<semaphore_mem>>)
        %c8_i32_60 = arith.constant 8 : i32
        %98 = arith.muli %31, %c8_i32_60 : i32
        %c6_i32 = arith.constant 6 : i32
        %99 = arith.addi %98, %c6_i32 : i32
        %c0_i32_61 = arith.constant 0 : i32
        %100 = arith.addi %c0_i32_61, %99 : i32
        %101 = arith.index_cast %arg0 : i32 to index
        %102 = arith.index_cast %100 : i32 to index
        %103 = memref.load %arg2[%101, %102] : memref<2x256xi32, #tpu.memory_space<smem>>
        %c0_i32_62 = arith.constant 0 : i32
        %c0_i32_63 = arith.constant 0 : i32
        %c0_i32_64 = arith.constant 0 : i32
        %104 = tpu.memref_slice %arg4[%103, %c0_i32_64] : memref<512x256xf32, #tpu.memory_space<any>> -> memref<1x256xf32, #tpu.memory_space<any>>
        %c0_i32_65 = arith.constant 0 : i32
        %105 = tpu.memref_slice %arg7[%c0_i32_62, %99, %c0_i32_65] : memref<2x128x256xf32, #tpu.memory_space<vmem>> -> memref<1x1x256xf32, #tpu.memory_space<vmem>>
        %106 = tpu.memref_squeeze %105 : memref<1x1x256xf32, #tpu.memory_space<vmem>> -> memref<1x256xf32, #tpu.memory_space<vmem>>
        %107 = tpu.memref_slice %arg8[%c0_i32_63] : memref<2x!tpu.dma_semaphore, #tpu.memory_space<semaphore_mem>> -> memref<1x!tpu.dma_semaphore, #tpu.memory_space<semaphore_mem>>
        %108 = tpu.memref_squeeze %107 : memref<1x!tpu.dma_semaphore, #tpu.memory_space<semaphore_mem>> -> memref<!tpu.dma_semaphore, #tpu.memory_space<semaphore_mem>>
        tpu.enqueue_dma source(%104 : memref<1x256xf32, #tpu.memory_space<any>>) target(%106 : memref<1x256xf32, #tpu.memory_space<vmem>>) target_semaphore(%108 : memref<!tpu.dma_semaphore, #tpu.memory_space<semaphore_mem>>)
        %c8_i32_66 = arith.constant 8 : i32
        %109 = arith.muli %31, %c8_i32_66 : i32
        %c7_i32 = arith.constant 7 : i32
        %110 = arith.addi %109, %c7_i32 : i32
        %c0_i32_67 = arith.constant 0 : i32
        %111 = arith.addi %c0_i32_67, %110 : i32
        %112 = arith.index_cast %arg0 : i32 to index
        %113 = arith.index_cast %111 : i32 to index
        %114 = memref.load %arg2[%112, %113] : memref<2x256xi32, #tpu.memory_space<smem>>
        %c0_i32_68 = arith.constant 0 : i32
        %c0_i32_69 = arith.constant 0 : i32
        %c0_i32_70 = arith.constant 0 : i32
        %115 = tpu.memref_slice %arg4[%114, %c0_i32_70] : memref<512x256xf32, #tpu.memory_space<any>> -> memref<1x256xf32, #tpu.memory_space<any>>
        %c0_i32_71 = arith.constant 0 : i32
        %116 = tpu.memref_slice %arg7[%c0_i32_68, %110, %c0_i32_71] : memref<2x128x256xf32, #tpu.memory_space<vmem>> -> memref<1x1x256xf32, #tpu.memory_space<vmem>>
        %117 = tpu.memref_squeeze %116 : memref<1x1x256xf32, #tpu.memory_space<vmem>> -> memref<1x256xf32, #tpu.memory_space<vmem>>
        %118 = tpu.memref_slice %arg8[%c0_i32_69] : memref<2x!tpu.dma_semaphore, #tpu.memory_space<semaphore_mem>> -> memref<1x!tpu.dma_semaphore, #tpu.memory_space<semaphore_mem>>
        %119 = tpu.memref_squeeze %118 : memref<1x!tpu.dma_semaphore, #tpu.memory_space<semaphore_mem>> -> memref<!tpu.dma_semaphore, #tpu.memory_space<semaphore_mem>>
        tpu.enqueue_dma source(%115 : memref<1x256xf32, #tpu.memory_space<any>>) target(%117 : memref<1x256xf32, #tpu.memory_space<vmem>>) target_semaphore(%119 : memref<!tpu.dma_semaphore, #tpu.memory_space<semaphore_mem>>)
      }
      %c16_i32_19 = arith.constant 16 : i32
    } else {
    }
    %c1_i32 = arith.constant 1 : i32
    %3 = arith.addi %arg1, %c1_i32 : i32
    %c2_i32 = arith.constant 2 : i32
    %4 = arith.cmpi slt, %3, %c2_i32 : i32
    %5 = arith.extui %4 : i1 to i32
    %c0_i32_1 = arith.constant 0 : i32
    %6 = arith.cmpi ne, %5, %c0_i32_1 : i32
    scf.if %6 {
      %c1_i32_16 = arith.constant 1 : i32
      %29 = arith.addi %arg1, %c1_i32_16 : i32
      %c1_i32_17 = arith.constant 1 : i32
      %30 = arith.addi %arg1, %c1_i32_17 : i32
      %c2_i32_18 = arith.constant 2 : i32
      %c0_i32_19 = arith.constant 0 : i32
      %31 = arith.cmpi eq, %c2_i32_18, %c0_i32_19 : i32
      %c1_i32_20 = arith.constant 1 : i32
      %32 = arith.select %31, %c1_i32_20, %c2_i32_18 : i32
      %33 = arith.remsi %30, %32 : i32
      %c0_i32_21 = arith.constant 0 : i32
      %34 = arith.cmpi ne, %33, %c0_i32_21 : i32
      %c0_i32_22 = arith.constant 0 : i32
      %35 = arith.cmpi slt, %33, %c0_i32_22 : i32
      %c0_i32_23 = arith.constant 0 : i32
      %36 = arith.cmpi slt, %32, %c0_i32_23 : i32
      %37 = arith.xori %35, %36 : i1
      %38 = arith.andi %37, %34 : i1
      %39 = arith.addi %33, %32 : i32
      %40 = arith.select %38, %39, %33 : i32
      %c128_i32_24 = arith.constant 128 : i32
      %41 = arith.muli %29, %c128_i32_24 : i32
      %c0_i32_25 = arith.constant 0 : i32
      %c16_i32_26 = arith.constant 16 : i32
      %42 = arith.addi %c0_i32_25, %c16_i32_26 : i32
      %c1_i32_27 = arith.constant 1 : i32
      scf.for %arg9 = %c0_i32_25 to %42 step %c1_i32_27  : i32 {
        %c1_i32_29 = arith.constant 1 : i32
        %43 = arith.muli %arg9, %c1_i32_29 : i32
        %c0_i32_30 = arith.constant 0 : i32
        %44 = arith.addi %c0_i32_30, %43 : i32
        %c8_i32 = arith.constant 8 : i32
        %45 = arith.muli %44, %c8_i32 : i32
        %c0_i32_31 = arith.constant 0 : i32
        %46 = arith.addi %45, %c0_i32_31 : i32
        %47 = arith.addi %41, %46 : i32
        %48 = arith.index_cast %arg0 : i32 to index
        %49 = arith.index_cast %47 : i32 to index
        %50 = memref.load %arg2[%48, %49] : memref<2x256xi32, #tpu.memory_space<smem>>
        %c0_i32_32 = arith.constant 0 : i32
        %51 = tpu.memref_slice %arg4[%50, %c0_i32_32] : memref<512x256xf32, #tpu.memory_space<any>> -> memref<1x256xf32, #tpu.memory_space<any>>
        %c0_i32_33 = arith.constant 0 : i32
        %52 = tpu.memref_slice %arg7[%40, %46, %c0_i32_33] : memref<2x128x256xf32, #tpu.memory_space<vmem>> -> memref<1x1x256xf32, #tpu.memory_space<vmem>>
        %53 = tpu.memref_squeeze %52 : memref<1x1x256xf32, #tpu.memory_space<vmem>> -> memref<1x256xf32, #tpu.memory_space<vmem>>
        %54 = tpu.memref_slice %arg8[%40] : memref<2x!tpu.dma_semaphore, #tpu.memory_space<semaphore_mem>> -> memref<1x!tpu.dma_semaphore, #tpu.memory_space<semaphore_mem>>
        %55 = tpu.memref_squeeze %54 : memref<1x!tpu.dma_semaphore, #tpu.memory_space<semaphore_mem>> -> memref<!tpu.dma_semaphore, #tpu.memory_space<semaphore_mem>>
        tpu.enqueue_dma source(%51 : memref<1x256xf32, #tpu.memory_space<any>>) target(%53 : memref<1x256xf32, #tpu.memory_space<vmem>>) target_semaphore(%55 : memref<!tpu.dma_semaphore, #tpu.memory_space<semaphore_mem>>)
        %c8_i32_34 = arith.constant 8 : i32
        %56 = arith.muli %44, %c8_i32_34 : i32
        %c1_i32_35 = arith.constant 1 : i32
        %57 = arith.addi %56, %c1_i32_35 : i32
        %58 = arith.addi %41, %57 : i32
        %59 = arith.index_cast %arg0 : i32 to index
        %60 = arith.index_cast %58 : i32 to index
        %61 = memref.load %arg2[%59, %60] : memref<2x256xi32, #tpu.memory_space<smem>>
        %c0_i32_36 = arith.constant 0 : i32
        %62 = tpu.memref_slice %arg4[%61, %c0_i32_36] : memref<512x256xf32, #tpu.memory_space<any>> -> memref<1x256xf32, #tpu.memory_space<any>>
        %c0_i32_37 = arith.constant 0 : i32
        %63 = tpu.memref_slice %arg7[%40, %57, %c0_i32_37] : memref<2x128x256xf32, #tpu.memory_space<vmem>> -> memref<1x1x256xf32, #tpu.memory_space<vmem>>
        %64 = tpu.memref_squeeze %63 : memref<1x1x256xf32, #tpu.memory_space<vmem>> -> memref<1x256xf32, #tpu.memory_space<vmem>>
        %65 = tpu.memref_slice %arg8[%40] : memref<2x!tpu.dma_semaphore, #tpu.memory_space<semaphore_mem>> -> memref<1x!tpu.dma_semaphore, #tpu.memory_space<semaphore_mem>>
        %66 = tpu.memref_squeeze %65 : memref<1x!tpu.dma_semaphore, #tpu.memory_space<semaphore_mem>> -> memref<!tpu.dma_semaphore, #tpu.memory_space<semaphore_mem>>
        tpu.enqueue_dma source(%62 : memref<1x256xf32, #tpu.memory_space<any>>) target(%64 : memref<1x256xf32, #tpu.memory_space<vmem>>) target_semaphore(%66 : memref<!tpu.dma_semaphore, #tpu.memory_space<semaphore_mem>>)
        %c8_i32_38 = arith.constant 8 : i32
        %67 = arith.muli %44, %c8_i32_38 : i32
        %c2_i32_39 = arith.constant 2 : i32
        %68 = arith.addi %67, %c2_i32_39 : i32
        %69 = arith.addi %41, %68 : i32
        %70 = arith.index_cast %arg0 : i32 to index
        %71 = arith.index_cast %69 : i32 to index
        %72 = memref.load %arg2[%70, %71] : memref<2x256xi32, #tpu.memory_space<smem>>
        %c0_i32_40 = arith.constant 0 : i32
        %73 = tpu.memref_slice %arg4[%72, %c0_i32_40] : memref<512x256xf32, #tpu.memory_space<any>> -> memref<1x256xf32, #tpu.memory_space<any>>
        %c0_i32_41 = arith.constant 0 : i32
        %74 = tpu.memref_slice %arg7[%40, %68, %c0_i32_41] : memref<2x128x256xf32, #tpu.memory_space<vmem>> -> memref<1x1x256xf32, #tpu.memory_space<vmem>>
        %75 = tpu.memref_squeeze %74 : memref<1x1x256xf32, #tpu.memory_space<vmem>> -> memref<1x256xf32, #tpu.memory_space<vmem>>
        %76 = tpu.memref_slice %arg8[%40] : memref<2x!tpu.dma_semaphore, #tpu.memory_space<semaphore_mem>> -> memref<1x!tpu.dma_semaphore, #tpu.memory_space<semaphore_mem>>
        %77 = tpu.memref_squeeze %76 : memref<1x!tpu.dma_semaphore, #tpu.memory_space<semaphore_mem>> -> memref<!tpu.dma_semaphore, #tpu.memory_space<semaphore_mem>>
        tpu.enqueue_dma source(%73 : memref<1x256xf32, #tpu.memory_space<any>>) target(%75 : memref<1x256xf32, #tpu.memory_space<vmem>>) target_semaphore(%77 : memref<!tpu.dma_semaphore, #tpu.memory_space<semaphore_mem>>)
        %c8_i32_42 = arith.constant 8 : i32
        %78 = arith.muli %44, %c8_i32_42 : i32
        %c3_i32 = arith.constant 3 : i32
        %79 = arith.addi %78, %c3_i32 : i32
        %80 = arith.addi %41, %79 : i32
        %81 = arith.index_cast %arg0 : i32 to index
        %82 = arith.index_cast %80 : i32 to index
        %83 = memref.load %arg2[%81, %82] : memref<2x256xi32, #tpu.memory_space<smem>>
        %c0_i32_43 = arith.constant 0 : i32
        %84 = tpu.memref_slice %arg4[%83, %c0_i32_43] : memref<512x256xf32, #tpu.memory_space<any>> -> memref<1x256xf32, #tpu.memory_space<any>>
        %c0_i32_44 = arith.constant 0 : i32
        %85 = tpu.memref_slice %arg7[%40, %79, %c0_i32_44] : memref<2x128x256xf32, #tpu.memory_space<vmem>> -> memref<1x1x256xf32, #tpu.memory_space<vmem>>
        %86 = tpu.memref_squeeze %85 : memref<1x1x256xf32, #tpu.memory_space<vmem>> -> memref<1x256xf32, #tpu.memory_space<vmem>>
        %87 = tpu.memref_slice %arg8[%40] : memref<2x!tpu.dma_semaphore, #tpu.memory_space<semaphore_mem>> -> memref<1x!tpu.dma_semaphore, #tpu.memory_space<semaphore_mem>>
        %88 = tpu.memref_squeeze %87 : memref<1x!tpu.dma_semaphore, #tpu.memory_space<semaphore_mem>> -> memref<!tpu.dma_semaphore, #tpu.memory_space<semaphore_mem>>
        tpu.enqueue_dma source(%84 : memref<1x256xf32, #tpu.memory_space<any>>) target(%86 : memref<1x256xf32, #tpu.memory_space<vmem>>) target_semaphore(%88 : memref<!tpu.dma_semaphore, #tpu.memory_space<semaphore_mem>>)
        %c8_i32_45 = arith.constant 8 : i32
        %89 = arith.muli %44, %c8_i32_45 : i32
        %c4_i32 = arith.constant 4 : i32
        %90 = arith.addi %89, %c4_i32 : i32
        %91 = arith.addi %41, %90 : i32
        %92 = arith.index_cast %arg0 : i32 to index
        %93 = arith.index_cast %91 : i32 to index
        %94 = memref.load %arg2[%92, %93] : memref<2x256xi32, #tpu.memory_space<smem>>
        %c0_i32_46 = arith.constant 0 : i32
        %95 = tpu.memref_slice %arg4[%94, %c0_i32_46] : memref<512x256xf32, #tpu.memory_space<any>> -> memref<1x256xf32, #tpu.memory_space<any>>
        %c0_i32_47 = arith.constant 0 : i32
        %96 = tpu.memref_slice %arg7[%40, %90, %c0_i32_47] : memref<2x128x256xf32, #tpu.memory_space<vmem>> -> memref<1x1x256xf32, #tpu.memory_space<vmem>>
        %97 = tpu.memref_squeeze %96 : memref<1x1x256xf32, #tpu.memory_space<vmem>> -> memref<1x256xf32, #tpu.memory_space<vmem>>
        %98 = tpu.memref_slice %arg8[%40] : memref<2x!tpu.dma_semaphore, #tpu.memory_space<semaphore_mem>> -> memref<1x!tpu.dma_semaphore, #tpu.memory_space<semaphore_mem>>
        %99 = tpu.memref_squeeze %98 : memref<1x!tpu.dma_semaphore, #tpu.memory_space<semaphore_mem>> -> memref<!tpu.dma_semaphore, #tpu.memory_space<semaphore_mem>>
        tpu.enqueue_dma source(%95 : memref<1x256xf32, #tpu.memory_space<any>>) target(%97 : memref<1x256xf32, #tpu.memory_space<vmem>>) target_semaphore(%99 : memref<!tpu.dma_semaphore, #tpu.memory_space<semaphore_mem>>)
        %c8_i32_48 = arith.constant 8 : i32
        %100 = arith.muli %44, %c8_i32_48 : i32
        %c5_i32 = arith.constant 5 : i32
        %101 = arith.addi %100, %c5_i32 : i32
        %102 = arith.addi %41, %101 : i32
        %103 = arith.index_cast %arg0 : i32 to index
        %104 = arith.index_cast %102 : i32 to index
        %105 = memref.load %arg2[%103, %104] : memref<2x256xi32, #tpu.memory_space<smem>>
        %c0_i32_49 = arith.constant 0 : i32
        %106 = tpu.memref_slice %arg4[%105, %c0_i32_49] : memref<512x256xf32, #tpu.memory_space<any>> -> memref<1x256xf32, #tpu.memory_space<any>>
        %c0_i32_50 = arith.constant 0 : i32
        %107 = tpu.memref_slice %arg7[%40, %101, %c0_i32_50] : memref<2x128x256xf32, #tpu.memory_space<vmem>> -> memref<1x1x256xf32, #tpu.memory_space<vmem>>
        %108 = tpu.memref_squeeze %107 : memref<1x1x256xf32, #tpu.memory_space<vmem>> -> memref<1x256xf32, #tpu.memory_space<vmem>>
        %109 = tpu.memref_slice %arg8[%40] : memref<2x!tpu.dma_semaphore, #tpu.memory_space<semaphore_mem>> -> memref<1x!tpu.dma_semaphore, #tpu.memory_space<semaphore_mem>>
        %110 = tpu.memref_squeeze %109 : memref<1x!tpu.dma_semaphore, #tpu.memory_space<semaphore_mem>> -> memref<!tpu.dma_semaphore, #tpu.memory_space<semaphore_mem>>
        tpu.enqueue_dma source(%106 : memref<1x256xf32, #tpu.memory_space<any>>) target(%108 : memref<1x256xf32, #tpu.memory_space<vmem>>) target_semaphore(%110 : memref<!tpu.dma_semaphore, #tpu.memory_space<semaphore_mem>>)
        %c8_i32_51 = arith.constant 8 : i32
        %111 = arith.muli %44, %c8_i32_51 : i32
        %c6_i32 = arith.constant 6 : i32
        %112 = arith.addi %111, %c6_i32 : i32
        %113 = arith.addi %41, %112 : i32
        %114 = arith.index_cast %arg0 : i32 to index
        %115 = arith.index_cast %113 : i32 to index
        %116 = memref.load %arg2[%114, %115] : memref<2x256xi32, #tpu.memory_space<smem>>
        %c0_i32_52 = arith.constant 0 : i32
        %117 = tpu.memref_slice %arg4[%116, %c0_i32_52] : memref<512x256xf32, #tpu.memory_space<any>> -> memref<1x256xf32, #tpu.memory_space<any>>
        %c0_i32_53 = arith.constant 0 : i32
        %118 = tpu.memref_slice %arg7[%40, %112, %c0_i32_53] : memref<2x128x256xf32, #tpu.memory_space<vmem>> -> memref<1x1x256xf32, #tpu.memory_space<vmem>>
        %119 = tpu.memref_squeeze %118 : memref<1x1x256xf32, #tpu.memory_space<vmem>> -> memref<1x256xf32, #tpu.memory_space<vmem>>
        %120 = tpu.memref_slice %arg8[%40] : memref<2x!tpu.dma_semaphore, #tpu.memory_space<semaphore_mem>> -> memref<1x!tpu.dma_semaphore, #tpu.memory_space<semaphore_mem>>
        %121 = tpu.memref_squeeze %120 : memref<1x!tpu.dma_semaphore, #tpu.memory_space<semaphore_mem>> -> memref<!tpu.dma_semaphore, #tpu.memory_space<semaphore_mem>>
        tpu.enqueue_dma source(%117 : memref<1x256xf32, #tpu.memory_space<any>>) target(%119 : memref<1x256xf32, #tpu.memory_space<vmem>>) target_semaphore(%121 : memref<!tpu.dma_semaphore, #tpu.memory_space<semaphore_mem>>)
        %c8_i32_54 = arith.constant 8 : i32
        %122 = arith.muli %44, %c8_i32_54 : i32
        %c7_i32 = arith.constant 7 : i32
        %123 = arith.addi %122, %c7_i32 : i32
        %124 = arith.addi %41, %123 : i32
        %125 = arith.index_cast %arg0 : i32 to index
        %126 = arith.index_cast %124 : i32 to index
        %127 = memref.load %arg2[%125, %126] : memref<2x256xi32, #tpu.memory_space<smem>>
        %c0_i32_55 = arith.constant 0 : i32
        %128 = tpu.memref_slice %arg4[%127, %c0_i32_55] : memref<512x256xf32, #tpu.memory_space<any>> -> memref<1x256xf32, #tpu.memory_space<any>>
        %c0_i32_56 = arith.constant 0 : i32
        %129 = tpu.memref_slice %arg7[%40, %123, %c0_i32_56] : memref<2x128x256xf32, #tpu.memory_space<vmem>> -> memref<1x1x256xf32, #tpu.memory_space<vmem>>
        %130 = tpu.memref_squeeze %129 : memref<1x1x256xf32, #tpu.memory_space<vmem>> -> memref<1x256xf32, #tpu.memory_space<vmem>>
        %131 = tpu.memref_slice %arg8[%40] : memref<2x!tpu.dma_semaphore, #tpu.memory_space<semaphore_mem>> -> memref<1x!tpu.dma_semaphore, #tpu.memory_space<semaphore_mem>>
        %132 = tpu.memref_squeeze %131 : memref<1x!tpu.dma_semaphore, #tpu.memory_space<semaphore_mem>> -> memref<!tpu.dma_semaphore, #tpu.memory_space<semaphore_mem>>
        tpu.enqueue_dma source(%128 : memref<1x256xf32, #tpu.memory_space<any>>) target(%130 : memref<1x256xf32, #tpu.memory_space<vmem>>) target_semaphore(%132 : memref<!tpu.dma_semaphore, #tpu.memory_space<semaphore_mem>>)
      }
      %c16_i32_28 = arith.constant 16 : i32
    } else {
    }
    %c2_i32_2 = arith.constant 2 : i32
    %c0_i32_3 = arith.constant 0 : i32
    %7 = arith.cmpi eq, %c2_i32_2, %c0_i32_3 : i32
    %c1_i32_4 = arith.constant 1 : i32
    %8 = arith.select %7, %c1_i32_4, %c2_i32_2 : i32
    %9 = arith.remsi %arg1, %8 : i32
    %c0_i32_5 = arith.constant 0 : i32
    %10 = arith.cmpi ne, %9, %c0_i32_5 : i32
    %c0_i32_6 = arith.constant 0 : i32
    %11 = arith.cmpi slt, %9, %c0_i32_6 : i32
    %c0_i32_7 = arith.constant 0 : i32
    %12 = arith.cmpi slt, %8, %c0_i32_7 : i32
    %13 = arith.xori %11, %12 : i1
    %14 = arith.andi %13, %10 : i1
    %15 = arith.addi %9, %8 : i32
    %16 = arith.select %14, %15, %9 : i32
    %c0_i32_8 = arith.constant 0 : i32
    %c16_i32 = arith.constant 16 : i32
    %17 = arith.addi %c0_i32_8, %c16_i32 : i32
    %c1_i32_9 = arith.constant 1 : i32
    scf.for %arg9 = %c0_i32_8 to %17 step %c1_i32_9  : i32 {
      %c1_i32_16 = arith.constant 1 : i32
      %29 = arith.muli %arg9, %c1_i32_16 : i32
      %c0_i32_17 = arith.constant 0 : i32
      %30 = arith.addi %c0_i32_17, %29 : i32
      %c8_i32 = arith.constant 8 : i32
      %31 = arith.muli %30, %c8_i32 : i32
      %c0_i32_18 = arith.constant 0 : i32
      %32 = arith.addi %31, %c0_i32_18 : i32
      %c0_i32_19 = arith.constant 0 : i32
      %c0_i32_20 = arith.constant 0 : i32
      %33 = tpu.memref_slice %arg4[%c0_i32_19, %c0_i32_20] : memref<512x256xf32, #tpu.memory_space<any>> -> memref<1x256xf32, #tpu.memory_space<any>>
      %c0_i32_21 = arith.constant 0 : i32
      %34 = tpu.memref_slice %arg7[%16, %32, %c0_i32_21] : memref<2x128x256xf32, #tpu.memory_space<vmem>> -> memref<1x1x256xf32, #tpu.memory_space<vmem>>
      %35 = tpu.memref_squeeze %34 : memref<1x1x256xf32, #tpu.memory_space<vmem>> -> memref<1x256xf32, #tpu.memory_space<vmem>>
      %36 = tpu.memref_slice %arg8[%16] : memref<2x!tpu.dma_semaphore, #tpu.memory_space<semaphore_mem>> -> memref<1x!tpu.dma_semaphore, #tpu.memory_space<semaphore_mem>>
      %37 = tpu.memref_squeeze %36 : memref<1x!tpu.dma_semaphore, #tpu.memory_space<semaphore_mem>> -> memref<!tpu.dma_semaphore, #tpu.memory_space<semaphore_mem>>
      tpu.wait_dma2 semaphore(%37 : memref<!tpu.dma_semaphore, #tpu.memory_space<semaphore_mem>>) src(%33 : memref<1x256xf32, #tpu.memory_space<any>>) dst(%35 : memref<1x256xf32, #tpu.memory_space<vmem>>)
      %c8_i32_22 = arith.constant 8 : i32
      %38 = arith.muli %30, %c8_i32_22 : i32
      %c1_i32_23 = arith.constant 1 : i32
      %39 = arith.addi %38, %c1_i32_23 : i32
      %c0_i32_24 = arith.constant 0 : i32
      %c0_i32_25 = arith.constant 0 : i32
      %40 = tpu.memref_slice %arg4[%c0_i32_24, %c0_i32_25] : memref<512x256xf32, #tpu.memory_space<any>> -> memref<1x256xf32, #tpu.memory_space<any>>
      %c0_i32_26 = arith.constant 0 : i32
      %41 = tpu.memref_slice %arg7[%16, %39, %c0_i32_26] : memref<2x128x256xf32, #tpu.memory_space<vmem>> -> memref<1x1x256xf32, #tpu.memory_space<vmem>>
      %42 = tpu.memref_squeeze %41 : memref<1x1x256xf32, #tpu.memory_space<vmem>> -> memref<1x256xf32, #tpu.memory_space<vmem>>
      %43 = tpu.memref_slice %arg8[%16] : memref<2x!tpu.dma_semaphore, #tpu.memory_space<semaphore_mem>> -> memref<1x!tpu.dma_semaphore, #tpu.memory_space<semaphore_mem>>
      %44 = tpu.memref_squeeze %43 : memref<1x!tpu.dma_semaphore, #tpu.memory_space<semaphore_mem>> -> memref<!tpu.dma_semaphore, #tpu.memory_space<semaphore_mem>>
      tpu.wait_dma2 semaphore(%44 : memref<!tpu.dma_semaphore, #tpu.memory_space<semaphore_mem>>) src(%40 : memref<1x256xf32, #tpu.memory_space<any>>) dst(%42 : memref<1x256xf32, #tpu.memory_space<vmem>>)
      %c8_i32_27 = arith.constant 8 : i32
      %45 = arith.muli %30, %c8_i32_27 : i32
      %c2_i32_28 = arith.constant 2 : i32
      %46 = arith.addi %45, %c2_i32_28 : i32
      %c0_i32_29 = arith.constant 0 : i32
      %c0_i32_30 = arith.constant 0 : i32
      %47 = tpu.memref_slice %arg4[%c0_i32_29, %c0_i32_30] : memref<512x256xf32, #tpu.memory_space<any>> -> memref<1x256xf32, #tpu.memory_space<any>>
      %c0_i32_31 = arith.constant 0 : i32
      %48 = tpu.memref_slice %arg7[%16, %46, %c0_i32_31] : memref<2x128x256xf32, #tpu.memory_space<vmem>> -> memref<1x1x256xf32, #tpu.memory_space<vmem>>
      %49 = tpu.memref_squeeze %48 : memref<1x1x256xf32, #tpu.memory_space<vmem>> -> memref<1x256xf32, #tpu.memory_space<vmem>>
      %50 = tpu.memref_slice %arg8[%16] : memref<2x!tpu.dma_semaphore, #tpu.memory_space<semaphore_mem>> -> memref<1x!tpu.dma_semaphore, #tpu.memory_space<semaphore_mem>>
      %51 = tpu.memref_squeeze %50 : memref<1x!tpu.dma_semaphore, #tpu.memory_space<semaphore_mem>> -> memref<!tpu.dma_semaphore, #tpu.memory_space<semaphore_mem>>
      tpu.wait_dma2 semaphore(%51 : memref<!tpu.dma_semaphore, #tpu.memory_space<semaphore_mem>>) src(%47 : memref<1x256xf32, #tpu.memory_space<any>>) dst(%49 : memref<1x256xf32, #tpu.memory_space<vmem>>)
      %c8_i32_32 = arith.constant 8 : i32
      %52 = arith.muli %30, %c8_i32_32 : i32
      %c3_i32 = arith.constant 3 : i32
      %53 = arith.addi %52, %c3_i32 : i32
      %c0_i32_33 = arith.constant 0 : i32
      %c0_i32_34 = arith.constant 0 : i32
      %54 = tpu.memref_slice %arg4[%c0_i32_33, %c0_i32_34] : memref<512x256xf32, #tpu.memory_space<any>> -> memref<1x256xf32, #tpu.memory_space<any>>
      %c0_i32_35 = arith.constant 0 : i32
      %55 = tpu.memref_slice %arg7[%16, %53, %c0_i32_35] : memref<2x128x256xf32, #tpu.memory_space<vmem>> -> memref<1x1x256xf32, #tpu.memory_space<vmem>>
      %56 = tpu.memref_squeeze %55 : memref<1x1x256xf32, #tpu.memory_space<vmem>> -> memref<1x256xf32, #tpu.memory_space<vmem>>
      %57 = tpu.memref_slice %arg8[%16] : memref<2x!tpu.dma_semaphore, #tpu.memory_space<semaphore_mem>> -> memref<1x!tpu.dma_semaphore, #tpu.memory_space<semaphore_mem>>
      %58 = tpu.memref_squeeze %57 : memref<1x!tpu.dma_semaphore, #tpu.memory_space<semaphore_mem>> -> memref<!tpu.dma_semaphore, #tpu.memory_space<semaphore_mem>>
      tpu.wait_dma2 semaphore(%58 : memref<!tpu.dma_semaphore, #tpu.memory_space<semaphore_mem>>) src(%54 : memref<1x256xf32, #tpu.memory_space<any>>) dst(%56 : memref<1x256xf32, #tpu.memory_space<vmem>>)
      %c8_i32_36 = arith.constant 8 : i32
      %59 = arith.muli %30, %c8_i32_36 : i32
      %c4_i32 = arith.constant 4 : i32
      %60 = arith.addi %59, %c4_i32 : i32
      %c0_i32_37 = arith.constant 0 : i32
      %c0_i32_38 = arith.constant 0 : i32
      %61 = tpu.memref_slice %arg4[%c0_i32_37, %c0_i32_38] : memref<512x256xf32, #tpu.memory_space<any>> -> memref<1x256xf32, #tpu.memory_space<any>>
      %c0_i32_39 = arith.constant 0 : i32
      %62 = tpu.memref_slice %arg7[%16, %60, %c0_i32_39] : memref<2x128x256xf32, #tpu.memory_space<vmem>> -> memref<1x1x256xf32, #tpu.memory_space<vmem>>
      %63 = tpu.memref_squeeze %62 : memref<1x1x256xf32, #tpu.memory_space<vmem>> -> memref<1x256xf32, #tpu.memory_space<vmem>>
      %64 = tpu.memref_slice %arg8[%16] : memref<2x!tpu.dma_semaphore, #tpu.memory_space<semaphore_mem>> -> memref<1x!tpu.dma_semaphore, #tpu.memory_space<semaphore_mem>>
      %65 = tpu.memref_squeeze %64 : memref<1x!tpu.dma_semaphore, #tpu.memory_space<semaphore_mem>> -> memref<!tpu.dma_semaphore, #tpu.memory_space<semaphore_mem>>
      tpu.wait_dma2 semaphore(%65 : memref<!tpu.dma_semaphore, #tpu.memory_space<semaphore_mem>>) src(%61 : memref<1x256xf32, #tpu.memory_space<any>>) dst(%63 : memref<1x256xf32, #tpu.memory_space<vmem>>)
      %c8_i32_40 = arith.constant 8 : i32
      %66 = arith.muli %30, %c8_i32_40 : i32
      %c5_i32 = arith.constant 5 : i32
      %67 = arith.addi %66, %c5_i32 : i32
      %c0_i32_41 = arith.constant 0 : i32
      %c0_i32_42 = arith.constant 0 : i32
      %68 = tpu.memref_slice %arg4[%c0_i32_41, %c0_i32_42] : memref<512x256xf32, #tpu.memory_space<any>> -> memref<1x256xf32, #tpu.memory_space<any>>
      %c0_i32_43 = arith.constant 0 : i32
      %69 = tpu.memref_slice %arg7[%16, %67, %c0_i32_43] : memref<2x128x256xf32, #tpu.memory_space<vmem>> -> memref<1x1x256xf32, #tpu.memory_space<vmem>>
      %70 = tpu.memref_squeeze %69 : memref<1x1x256xf32, #tpu.memory_space<vmem>> -> memref<1x256xf32, #tpu.memory_space<vmem>>
      %71 = tpu.memref_slice %arg8[%16] : memref<2x!tpu.dma_semaphore, #tpu.memory_space<semaphore_mem>> -> memref<1x!tpu.dma_semaphore, #tpu.memory_space<semaphore_mem>>
      %72 = tpu.memref_squeeze %71 : memref<1x!tpu.dma_semaphore, #tpu.memory_space<semaphore_mem>> -> memref<!tpu.dma_semaphore, #tpu.memory_space<semaphore_mem>>
      tpu.wait_dma2 semaphore(%72 : memref<!tpu.dma_semaphore, #tpu.memory_space<semaphore_mem>>) src(%68 : memref<1x256xf32, #tpu.memory_space<any>>) dst(%70 : memref<1x256xf32, #tpu.memory_space<vmem>>)
      %c8_i32_44 = arith.constant 8 : i32
      %73 = arith.muli %30, %c8_i32_44 : i32
      %c6_i32 = arith.constant 6 : i32
      %74 = arith.addi %73, %c6_i32 : i32
      %c0_i32_45 = arith.constant 0 : i32
      %c0_i32_46 = arith.constant 0 : i32
      %75 = tpu.memref_slice %arg4[%c0_i32_45, %c0_i32_46] : memref<512x256xf32, #tpu.memory_space<any>> -> memref<1x256xf32, #tpu.memory_space<any>>
      %c0_i32_47 = arith.constant 0 : i32
      %76 = tpu.memref_slice %arg7[%16, %74, %c0_i32_47] : memref<2x128x256xf32, #tpu.memory_space<vmem>> -> memref<1x1x256xf32, #tpu.memory_space<vmem>>
      %77 = tpu.memref_squeeze %76 : memref<1x1x256xf32, #tpu.memory_space<vmem>> -> memref<1x256xf32, #tpu.memory_space<vmem>>
      %78 = tpu.memref_slice %arg8[%16] : memref<2x!tpu.dma_semaphore, #tpu.memory_space<semaphore_mem>> -> memref<1x!tpu.dma_semaphore, #tpu.memory_space<semaphore_mem>>
      %79 = tpu.memref_squeeze %78 : memref<1x!tpu.dma_semaphore, #tpu.memory_space<semaphore_mem>> -> memref<!tpu.dma_semaphore, #tpu.memory_space<semaphore_mem>>
      tpu.wait_dma2 semaphore(%79 : memref<!tpu.dma_semaphore, #tpu.memory_space<semaphore_mem>>) src(%75 : memref<1x256xf32, #tpu.memory_space<any>>) dst(%77 : memref<1x256xf32, #tpu.memory_space<vmem>>)
      %c8_i32_48 = arith.constant 8 : i32
      %80 = arith.muli %30, %c8_i32_48 : i32
      %c7_i32 = arith.constant 7 : i32
      %81 = arith.addi %80, %c7_i32 : i32
      %c0_i32_49 = arith.constant 0 : i32
      %c0_i32_50 = arith.constant 0 : i32
      %82 = tpu.memref_slice %arg4[%c0_i32_49, %c0_i32_50] : memref<512x256xf32, #tpu.memory_space<any>> -> memref<1x256xf32, #tpu.memory_space<any>>
      %c0_i32_51 = arith.constant 0 : i32
      %83 = tpu.memref_slice %arg7[%16, %81, %c0_i32_51] : memref<2x128x256xf32, #tpu.memory_space<vmem>> -> memref<1x1x256xf32, #tpu.memory_space<vmem>>
      %84 = tpu.memref_squeeze %83 : memref<1x1x256xf32, #tpu.memory_space<vmem>> -> memref<1x256xf32, #tpu.memory_space<vmem>>
      %85 = tpu.memref_slice %arg8[%16] : memref<2x!tpu.dma_semaphore, #tpu.memory_space<semaphore_mem>> -> memref<1x!tpu.dma_semaphore, #tpu.memory_space<semaphore_mem>>
      %86 = tpu.memref_squeeze %85 : memref<1x!tpu.dma_semaphore, #tpu.memory_space<semaphore_mem>> -> memref<!tpu.dma_semaphore, #tpu.memory_space<semaphore_mem>>
      tpu.wait_dma2 semaphore(%86 : memref<!tpu.dma_semaphore, #tpu.memory_space<semaphore_mem>>) src(%82 : memref<1x256xf32, #tpu.memory_space<any>>) dst(%84 : memref<1x256xf32, #tpu.memory_space<vmem>>)
    }
    %c16_i32_10 = arith.constant 16 : i32
    %c128_i32 = arith.constant 128 : i32
    %18 = arith.muli %arg1, %c128_i32 : i32
    %19 = tpu.assume_multiple %18, 8 : i32
    %20 = arith.index_cast %19 : i32 to index
    %c0 = arith.constant 0 : index
    %21 = vector.load %arg5[%20, %c0] : memref<256x256xf32, #tpu.memory_space<vmem>>, vector<128x256xf32>
    %22 = arith.index_cast %16 : i32 to index
    %c0_11 = arith.constant 0 : index
    %c0_12 = arith.constant 0 : index
    %23 = vector.load %arg7[%22, %c0_11, %c0_12] : memref<2x128x256xf32, #tpu.memory_space<vmem>>, vector<1x128x256xf32>
    %24 = vector.shape_cast %23 : vector<1x128x256xf32> to vector<128x256xf32>
    %25 = arith.addf %24, %21 : vector<128x256xf32>
    %c0_13 = arith.constant 0 : index
    %c0_14 = arith.constant 0 : index
    %c0_15 = arith.constant 0 : index
    %26 = vector.load %arg6[%c0_13, %c0_14, %c0_15] : memref<1x128x256xf32, #tpu.memory_space<vmem>>, vector<1x128x256xf32>
    %27 = vector.shape_cast %26 : vector<1x128x256xf32> to vector<128x256xf32>
    %28 = vector.shape_cast %25 : vector<128x256xf32> to vector<1x128x256xf32>
    tpu.vector_store %arg6[%c0_13, %c0_14, %c0_15], %28 {strides = array<i32>} : memref<1x128x256xf32, #tpu.memory_space<vmem>>, vector<1x128x256xf32>,
    return
  }
  func.func @transform_1(%arg0: i32, %arg1: i32, %arg2: memref<2x256xi32, #tpu.memory_space<smem>>, %arg3: memref<2x256xi32, #tpu.memory_space<smem>>) -> (i32, i32) {
    %c0_i32 = arith.constant 0 : i32
    %c0_i32_0 = arith.constant 0 : i32
    %c0_i32_1 = arith.constant 0 : i32
    return %c0_i32, %c0_i32_0 : i32, i32
  }
  func.func @transform_2(%arg0: i32, %arg1: i32, %arg2: memref<2x256xi32, #tpu.memory_space<smem>>, %arg3: memref<2x256xi32, #tpu.memory_space<smem>>) -> (i32, i32, i32) {
    %c0_i32 = arith.constant 0 : i32
    %c0_i32_0 = arith.constant 0 : i32
    return %arg0, %arg1, %c0_i32 : i32, i32, i32
  }
}

</mosaic_0001>

<bundles_post_ra>
// kernel: gpt2_embeddings.1
= control target key start
LH: loop header
LB: loop body
LE: loop exit
PB: predicated region body
PF: predicated region fallthrough
CT: control target
= control target key end

     0   :  { %s2607_s0 = inlined_call_operand.vmem [shape: s32[2,256], index: 0, kind: input, shape index: {}]   ;;  %s2608_s2 = inlined_call_operand.hbm [shape: f32[512,256], index: 2, kind: input, shape index: {}]   ;;  %s2609_s3 = inlined_call_operand.hbm [shape: f32[256,256], index: 3, kind: input, shape index: {}]   ;;  %s2610_s4 = inlined_call_operand.hbm [shape: f32[2,256,256], index: 4, kind: output, shape index: {}]   ;;  %s2611_s1 = inlined_call_operand.vmem [shape: s32[2,256], index: 1, kind: input, shape index: {}]  }
   0x1   :  { %2652 = sst [smem:[#allocation52_spill]] %s2609_s3  ;;  %s9_s17 = sshll.u32 %s2607_s0, 4  ;;  %s10_s17 = int_to_ptr.vmem [resolvable:$true] %s9_s17 }
   0x2   :  { %2653 = sst [smem:[#allocation53_spill]] %s2610_s4  ;;  %s13_s20 = sshll.u32 %s2611_s1, 4  ;;  %s14_s20 = int_to_ptr.vmem [resolvable:$true] %s13_s20 }
   0x3   :  { %s1268_s21 = scalar_lea.vmem %s10_s17, 64  ;;  %p1273_p1 = scmp.lt.s32.totalorder %s10_s17, %s10_s17 }
   0x4   :  { %p1269_p0 = scmp.ne.s32.totalorder %s10_s17, %s1268_s21  ;;  %p1274_p2 = scmp.lt.s32.totalorder %s1268_s21, %s1268_s21 }
   0x6   :  { %p1275_p3 = por %p1274_p2, %p1273_p1 }
   0x8   :  { %p1276_p4 = pnand %p1275_p3, %p1269_p0 }
   0xa   :  { %1279 = shalt.err (!%p1276_p4)  }
   0xb   :  { %s1796_s22 = smov [#allocation5]   ;;  %s1280_s23 = scalar_lea.vmem %s14_s20, 64 }
   0xc   :  { %12 = dma.vmem_to_smem %s10_s17, 64, %s1796_s22, [#allocation4] }
   0xd   :  { %p1281_p5 = scmp.ne.s32.totalorder %s14_s20, %s1280_s23  ;;  %p1285_p6 = scmp.lt.s32.totalorder %s14_s20, %s14_s20 }
   0xe   :  { %p1286_p7 = scmp.lt.s32.totalorder %s1280_s23, %s1280_s23 }
  0x10   :  { %p1287_p8 = por %p1286_p7, %p1285_p6 }
  0x12   :  { %p1288_p9 = pnand %p1287_p8, %p1281_p5 }
  0x14   :  { %1291 = shalt.err (!%p1288_p9)  }
  0x15   :  { %s1797_s0 = smov [#allocation6]  }
  0x16   :  { %16 = dma.vmem_to_smem %s14_s20, 64, %s1797_s0, [#allocation4] }
  0x17   :  { %1740 = dma.done.wait [#allocation4], 128 }
  0x18   :  { %1741 = vsyncadd [#allocation4], 4294967168 }
  0x19   :  { %18 = sfence }
  0x1a   :  { %19 = vsyncpa [#allocation8], 0 }
  0x1b   :  { %20 = vsyncpa [#allocation9], 0 }
  0x1c   :  { %22 = vsyncpa [#allocation9 + $0x1], 0  ;;  %s1841_s1 = smov 0   ;;  %s1843_s24 = smov 0  }
  0x1d   :  { %s1845_s25 = smov 0   ;;  %s1847_s26 = smov 0  }
  0x1e   :  { %s1849_s27 = smov 0   ;;  %s1851_s28 = smov 0  }
  0x1f   :  { %s1853_s29 = smov 0   ;;  %s1855_s30 = smov 0  }
  0x20 LB: > { %2654 = sst [smem:[#allocation31_spill]] %s1754_s1  ;;  %s1046_s5 = sadd.s32 4294967295, %s1782_s30   ;;  %s1782_s30 = sphi %s1855_s30, %s28_s30   ;;  %s1778_s29 = sphi %s1853_s29, %s2715_s29   ;;  %s1774_s28 = sphi %s1851_s28, %s2714_s28   ;;  %s1770_s27 = sphi %s1849_s27, %s2713_s27   ;;  %s1766_s26 = sphi %s1847_s26, %s2712_s26   ;;  %s1762_s25 = sphi %s1845_s25, %s2711_s25   ;;  %s1758_s24 = sphi %s1843_s24, %s2710_s24   ;;  %s1754_s1 = sphi %s1841_s1, %s2709_s1  }
  0x21   : > { %2655 = sst [smem:[#allocation32_spill]] %s1758_s24  ;;  %s1047_s6 = sadd.s32 4294967294, %s1782_s30  }
  0x22   : > { %2656 = sst [smem:[#allocation33_spill]] %s1762_s25  ;;  %s37_s7 = sadd.s32 1, %s1774_s28 }
  0x23   : > { %2657 = sst [smem:[#allocation34_spill]] %s1766_s26  ;;  %s40_s8 = sadd.s32 1, %s1778_s29 }
  0x24   : > { %2658 = sst [smem:[#allocation35_spill]] %s1770_s27  ;;  %p38_p10 = scmp.ge.s32.totalorder %s37_s7, 2 }
  0x25   : > { %2659 = sst [smem:[#allocation36_spill]] %s1774_s28  ;;  %s70_s9 = sadd.s32 1, %s1762_s25 }
  0x26   : > { %2660 = sst [smem:[#allocation37_spill]] %s1778_s29  ;;  %p80_p11 = scmp.ne.s32.totalorder %s1762_s25, %s1758_s24 }
  0x27   : > { %2661 = sst [smem:[#allocation38_spill]] %s1782_s30  ;;  %p81_p12 = scmp.eq.s32.totalorder %s1046_s5, 3 }
  0x28   : > { %s2717_s7 = smov (%p38_p10, %s37_s7), 0  ;;  %s2719_s8 = smov (!%p38_p10, %s40_s8), %s1778_s29 }
  0x29   : > { %2662 = sst [smem:[#allocation39_spill]] %s2717_s7  ;;  %s66_s10 = ssub.s32 %s1774_s28, %s2717_s7 }
  0x2a   : > { %p1893_p13 = por %p81_p12, %p80_p11  ;;  %p42_p0 = scmp.ge.s32.totalorder %s2719_s8, 2 }
  0x2b   : > { %p86_p1 = scmp.ne.s32.totalorder %s1758_s24, %s1754_s1  ;;  %p87_p2 = scmp.eq.s32.totalorder %s1047_s6, 3 }
  0x2c   : > { %s2663_s11 = scalar_select %p1893_p13, 1, 0 }
  0x2d   : > { %p1048_p3 = scmp.ge.s32.totalorder %s1782_s30, 1  ;;  %s2721_s8 = smov (%p42_p0, %s2719_s8), 0 }
  0x2e   : > { %2664 = sst [smem:[#allocation40_spill]] %s2663_s11  ;;  %p1902_p4 = por %p87_p2, %p86_p1 }
  0x2f   : > { %2665 = sst [smem:[#allocation41_spill]] %s2721_s8  ;;  %p94_p5 = scmp.lt.s32.totalorder %s1782_s30, 5 }
  0x30   : > { %s2666_s12 = scalar_select %p1902_p4, 1, 0 }
  0x31   : > { %s65_s13 = ssub.s32 %s1778_s29, %s2721_s8  ;;  %p1909_p6 = pnand %p1048_p3, %p94_p5 }
  0x32   : > { %2667 = sst [smem:[#allocation42_spill]] %s2666_s12  ;;  %s67_s14 = sor.u32 %s66_s10, %s65_s13 }
  0x33   : > { %p68_p7 = scmp.eq.s32.totalorder %s67_s14, 0  ;;  %p1913_p8 = scmp.eq.s32.totalorder %s1046_s5, 0 }
  0x34   : > { %p1158_p9 = pneg %p1909_p6  ;;  %s1798_s18 = smov [#allocation7]  }
  0x35   : > { %s1920_s17 = scalar_select %p68_p7, %s1762_s25, %s70_s9  }
  0x36   : > { %s106_s19 = sshll.u32 %s1798_s18, 4  ;;  %p1924_p10 = pnand %p1913_p8, %p1158_p9  ;;  %s107_s19 = int_to_ptr.vmem [resolvable:$true] %s106_s19 }
  0x37   : > { %2670 = sst [smem:[#allocation43_spill]] %s1920_s17  ;;  %s1303_s21 = scalar_lea.vmem %s107_s19, 8192 }
  0x38   : > { %p1294_p11 = pneg %p1924_p10  ;;  %p1304_p12 = scmp.ne.s32.totalorder %s107_s19, %s1303_s21 }
  0x39   : > { %p1311_p2 = scmp.lt.s32.totalorder %s107_s19, %s107_s19  ;;  %p1312_p3 = scmp.lt.s32.totalorder %s1303_s21, %s1303_s21 }
  0x3a   : > { %p1306_p0 = pnand %p1304_p12, %p1294_p11 }
  0x3b   : > { %p1313_p5 = por %p1312_p3, %p1311_p2 }
  0x3c   : > { %p1307_p1 = pneg %p1306_p0 }
  0x3e   : > { %p1314_p7 = pnand %p1313_p5, %p1307_p1 }
  0x40   : > { %1317 = shalt.err (!%p1314_p7)
}
  0x41   : > { %s1799_s22 = smov 256   ;;  %s1800_s23 = smov 16  }
  0x42   : > { %s2672_s3 = sld [smem:[#allocation52_spill]] }
  0x44   : > { %122 = sbr.rel (%p1909_p6) target bundleno = 689 (0x2b1), region = 24 }
  0x48   : > { %1161 = dma.hbm_to_vmem [thread:$0]  (!%p1924_p10), %s2672_s3, 8192, %s107_s19, [#allocation8], %s1799_s22, %s1799_s22, %s1800_s23  }
  0x49   : > { %1743 = dma.done.wait (%p1913_p8), [#allocation8], 8192  }
  0x4a   : > { %1745 = vsyncadd (%p1913_p8), [#allocation8], 4294959104  ;;  %s2612_s6 = sand.u32 1, %s1758_s24   ;;  %p1053_p9 = scmp.ne.s32.totalorder %s1766_s26, 0 }
  0x4b   : > { %s1052_s9 = sshll.u32 %s2612_s6, 8  ;;  %s1947_s13 = smov (!%p1053_p9), 0  }
  0x4c   : > { %s1944_s10 = scalar_lea.vmem [#allocation10], %s1052_s9  ;;  %141 = sbr.rel (%p1053_p9) target bundleno = 326 (0x146), region = 32 }
  0x4d   : > { %2673 = sst [smem:[#allocation44_spill]] %s1944_s10 }
  0x51 LB: >> { %s2674_s27 = sld [smem:[#allocation35_spill]]  ;;  %s1956_s16 = sshll.u32 %s1786_s13, 3  ;;  %s1786_s13 = sphi %s1947_s13, %s147_s13  }
  0x52   : >> { %s149_s19 = sshra.s32 %s1956_s16, 7  ;;  %s159_s20 = sand.u32 127, %s1956_s16 }
  0x53   : >> { %s170_s9 = sshrl.u32 %s1956_s16, 3  ;;  %s171_s6 = sand.u32 7, %s1956_s16  }
  0x54   : >> { %s1060_s3 = sshll.u32 %s170_s9, 4  ;;  %s1968_s7 = sadd.s32 1, %s1956_s16 }
  0x55   : >> { %s173_s8 = sadd.s32 %s1060_s3, %s171_s6  ;;  %s181_s17 = sshra.s32 %s1968_s7, 7 }
  0x56   : >> { %s174_s29 = scalar_lea.vmem [#allocation2], %s173_s8  ;;  %s1982_s4 = scalar_lea.hbm %s2608_s2, 16384 }
  0x57   : >> { %s151_s14 = sshra.s32 %s2674_s27, 1  ;;  %s157_s18 = sand.u32 1, %s2674_s27 }
  0x58   : >> { %s1953_s15 = sshll.u32 %s151_s14, 1  ;;  %s1962_s22 = sshll.u32 %s157_s18, 7 }
  0x59   : >> { %s154_s21 = sadd.s32 %s1953_s15, %s149_s19  ;;  %s161_s0 = sadd.s32 %s1962_s22, %s159_s20 }
  0x5a   : >> { %s1056_s23 = sshll.u32 %s154_s21, 8  ;;  %s176_s28 = sshll.u32 %s174_s29, 4  ;;  %s1971_s28 = int_to_ptr.vmem [resolvable:$true] %s176_s28 }
  0x5b   : >> { %s162_s5 = sadd.s32 %s1056_s23, %s161_s0  ;;  %s183_s18 = sadd.s32 %s1953_s15, %s181_s17 }
  0x5c   : >> { %s163_s14 = sld [smem:[#allocation5 + %s162_s5]]  ;;  %s1061_s23 = sshll.u32 %s183_s18, 8 }
  0x5d   : >> { %s186_s5 = sand.u32 127, %s1968_s7 }
  0x5e   : >> { %s187_s12 = sadd.s32 %s1962_s22, %s186_s5 }
  0x5f   : >> { %s188_s1 = sadd.s32 %s1061_s23, %s187_s12 }
  0x62   : >> { %s164_s19 = sshrl.u32 %s163_s14, 3  ;;  %s165_s21 = sand.u32 7, %s163_s14  }
  0x63   : >> { %s1058_s20 = sshll.u32 %s164_s19, 4 }
  0x64   : >> { %s167_s0 = sadd.s32 %s1058_s20, %s165_s21 }
  0x65   : >> { %s1059_s25 = sshll.u32 %s167_s0, 4 }
  0x66   : >> { %s169_s6 = scalar_lea.hbm %s2608_s2, %s1059_s25 }
  0x67   : >> { %s1318_s30 = scalar_lea.hbm %s169_s6, 32  ;;  %p1321_p8 = scmp.lt.s32.totalorder %s169_s6, %s2608_s2 }
  0x68   : >> { %p1319_p6 = scmp.ne.s32.totalorder %s169_s6, %s1318_s30  ;;  %p1322_p10 = scmp.lt.s32.totalorder %s1982_s4, %s1318_s30 }
  0x6a   : >> { %p1323_p11 = por %p1322_p10, %p1321_p8 }
  0x6c   : >> { %p1324_p12 = pnand %p1323_p11, %p1319_p6 }
  0x6e   : >> { %1327 = shalt.err (!%p1324_p12)  }
  0x6f   : >> { %s1328_s25 = scalar_lea.vmem %s1971_s28, 32  ;;  %s1801_s12 = smov [#allocation2]  }
  0x70   : >> { %p1329_p0 = scmp.ne.s32.totalorder %s1971_s28, %s1328_s25  ;;  %s1330_s18 = sshll.u32 %s1801_s12, 4  ;;  %s1990_s18 = int_to_ptr.vmem [resolvable:$false] %s1330_s18 }
  0x71   : >> { %s1993_s19 = scalar_lea.vmem %s1990_s18, 8192  ;;  %p1333_p1 = scmp.lt.s32.totalorder %s1971_s28, %s1990_s18 }
  0x72   : >> { %p1334_p2 = scmp.lt.s32.totalorder %s1993_s19, %s1328_s25 }
  0x74   : >> { %p1335_p3 = por %p1334_p2, %p1333_p1 }
  0x76   : >> { %p1336_p5 = pnand %p1335_p3, %p1329_p0 }
  0x78   : >> { %1339 = shalt.err (!%p1336_p5)  }
  0x79   : >> { %s2623_s30 = smov 128   ;;  %s2625_s21 = smov 1  }
  0x7a   : >> { %179 = dma.hbm_to_vmem [thread:$0]  %s169_s6, 32, %s1971_s28, [#allocation3], %s2623_s30, %s2623_s30, %s2625_s21 }
  0x7b   : >> { %s189_s20 = sld [smem:[#allocation5 + %s188_s1]]  ;;  %s196_s23 = sshrl.u32 %s1968_s7, 3 }
  0x7c   : >> { %s197_s0 = sand.u32 7, %s1968_s7   ;;  %s1064_s5 = sshll.u32 %s196_s23, 4 }
  0x7d   : >> { %s199_s9 = sadd.s32 %s1064_s5, %s197_s0  ;;  %s2005_s3 = sadd.s32 2, %s1956_s16 }
  0x7e   : >> { %s207_s29 = sshra.s32 %s2005_s3, 7  ;;  %s200_s8 = scalar_lea.vmem [#allocation2], %s199_s9 }
  0x7f   : >> { %s202_s17 = sshll.u32 %s200_s8, 4  ;;  %s209_s14 = sadd.s32 %s1953_s15, %s207_s29  ;;  %s2009_s17 = int_to_ptr.vmem [resolvable:$true] %s202_s17 }
  0x80   : >> { %s1065_s25 = sshll.u32 %s209_s14, 8  ;;  %s212_s6 = sand.u32 127, %s2005_s3 }
  0x81   : >> { %s190_s12 = sshrl.u32 %s189_s20, 3  ;;  %s191_s28 = sand.u32 7, %s189_s20  }
  0x82   : >> { %s1062_s1 = sshll.u32 %s190_s12, 4  ;;  %s213_s7 = sadd.s32 %s1962_s22, %s212_s6 }
  0x83   : >> { %s193_s30 = sadd.s32 %s1062_s1, %s191_s28  ;;  %s214_s0 = sadd.s32 %s1065_s25, %s213_s7 }
  0x84   : >> { %s1063_s23 = sshll.u32 %s193_s30, 4  ;;  %s2016_s24 = sld [smem:[#allocation5 + %s214_s0]] }
  0x85   : >> { %s195_s11 = scalar_lea.hbm %s2608_s2, %s1063_s23 }
  0x86   : >> { %s1340_s9 = scalar_lea.hbm %s195_s11, 32  ;;  %p1343_p9 = scmp.lt.s32.totalorder %s195_s11, %s2608_s2 }
  0x87   : >> { %p1341_p7 = scmp.ne.s32.totalorder %s195_s11, %s1340_s9  ;;  %p1344_p6 = scmp.lt.s32.totalorder %s1982_s4, %s1340_s9 }
  0x89   : >> { %p1345_p8 = por %p1344_p6, %p1343_p9 }
  0x8b   : >> { %p1346_p10 = pnand %p1345_p8, %p1341_p7 }
  0x8d   : >> { %1349 = shalt.err (!%p1346_p10)  }
  0x8e   : >> { %s1350_s30 = scalar_lea.vmem %s2009_s17, 32  ;;  %p1355_p12 = scmp.lt.s32.totalorder %s2009_s17, %s1990_s18 }
  0x8f   : >> { %p1351_p11 = scmp.ne.s32.totalorder %s2009_s17, %s1350_s30  ;;  %p1356_p0 = scmp.lt.s32.totalorder %s1993_s19, %s1350_s30 }
  0x91   : >> { %p1357_p1 = por %p1356_p0, %p1355_p12 }
  0x93   : >> { %p1358_p2 = pnand %p1357_p1, %p1351_p11 }
  0x95   : >> { %1361 = shalt.err (!%p1358_p2)  }
  0x96   : >> { %s2675_s21 = smov 1   ;;  %s2676_s20 = smov 128  }
  0x97   : >> { %205 = dma.hbm_to_vmem [thread:$0]  %s195_s11, 32, %s2009_s17, [#allocation3], %s2676_s20, %s2676_s20, %s2675_s21 }
  0x98   : >> { %s222_s14 = sshrl.u32 %s2005_s3, 3  ;;  %s223_s25 = sand.u32 7, %s2005_s3  }
  0x99   : >> { %s1068_s12 = sshll.u32 %s222_s14, 4  ;;  %s2034_s28 = sadd.s32 3, %s1956_s16 }
  0x9a   : >> { %s225_s1 = sadd.s32 %s1068_s12, %s223_s25  ;;  %s233_s6 = sshra.s32 %s2034_s28, 7 }
  0x9b   : >> { %s2038_s7 = sadd.s32 %s1953_s15, %s233_s6  ;;  %s216_s23 = sshrl.u32 %s2016_s24, 3 }
  0x9c   : >> { %s217_s0 = sand.u32 7, %s2016_s24   ;;  %s1066_s5 = sshll.u32 %s216_s23, 4 }
  0x9d   : >> { %s226_s9 = scalar_lea.vmem [#allocation2], %s225_s1  ;;  %s219_s8 = sadd.s32 %s1066_s5, %s217_s0 }
  0x9e   : >> { %s228_s29 = sshll.u32 %s226_s9, 4  ;;  %s1067_s11 = sshll.u32 %s219_s8, 4  ;;  %s229_s29 = int_to_ptr.vmem [resolvable:$true] %s228_s29 }
  0x9f   : >> { %s1069_s3 = sshll.u32 %s2038_s7, 8  ;;  %s221_s14 = scalar_lea.hbm %s2608_s2, %s1067_s11 }
  0xa0   : >> { %s238_s10 = sand.u32 127, %s2034_s28  ;;  %s1362_s25 = scalar_lea.hbm %s221_s14, 32 }
  0xa1   : >> { %p1363_p3 = scmp.ne.s32.totalorder %s221_s14, %s1362_s25  ;;  %p1365_p5 = scmp.lt.s32.totalorder %s221_s14, %s2608_s2 }
  0xa2   : >> { %p1366_p7 = scmp.lt.s32.totalorder %s1982_s4, %s1362_s25 }
  0xa4   : >> { %p1367_p9 = por %p1366_p7, %p1365_p5 }
  0xa6   : >> { %p1368_p6 = pnand %p1367_p9, %p1363_p3 }
  0xa8   : >> { %1371 = shalt.err (!%p1368_p6)  }
  0xa9   : >> { %s1372_s24 = scalar_lea.vmem %s229_s29, 32  ;;  %p1377_p10 = scmp.lt.s32.totalorder %s229_s29, %s1990_s18 }
  0xaa   : >> { %p1373_p8 = scmp.ne.s32.totalorder %s229_s29, %s1372_s24  ;;  %p1378_p11 = scmp.lt.s32.totalorder %s1993_s19, %s1372_s24 }
  0xac   : >> { %p1379_p12 = por %p1378_p11, %p1377_p10 }
  0xae   : >> { %p1380_p0 = pnand %p1379_p12, %p1373_p8 }
  0xb0   : >> { %1383 = shalt.err (!%p1380_p0)  }
  0xb1   : >> { %231 = dma.hbm_to_vmem [thread:$0]  %s221_s14, 32, %s229_s29, [#allocation3], %s2676_s20, %s2676_s20, %s2675_s21 }
  0xb2   : >> { %s239_s1 = sadd.s32 %s1962_s22, %s238_s10  ;;  %s248_s7 = sshrl.u32 %s2034_s28, 3 }
  0xb3   : >> { %s240_s23 = sadd.s32 %s1069_s3, %s239_s1  ;;  %s249_s0 = sand.u32 7, %s2034_s28  }
  0xb4   : >> { %s241_s5 = sld [smem:[#allocation5 + %s240_s23]]  ;;  %s1072_s9 = sshll.u32 %s248_s7, 4 }
  0xb5   : >> { %s251_s8 = sadd.s32 %s1072_s9, %s249_s0  ;;  %s2060_s11 = sadd.s32 4, %s1956_s16 }
  0xb6   : >> { %s259_s17 = sshra.s32 %s2060_s11, 7  ;;  %s252_s30 = scalar_lea.vmem [#allocation2], %s251_s8 }
  0xb7   : >> { %s254_s25 = sshll.u32 %s252_s30, 4  ;;  %s261_s12 = sadd.s32 %s1953_s15, %s259_s17  ;;  %s2064_s25 = int_to_ptr.vmem [resolvable:$true] %s254_s25 }
  0xb8   : >> { %s1073_s10 = sshll.u32 %s261_s12, 8  ;;  %s264_s29 = sand.u32 127, %s2060_s11 }
  0xb9   : >> { %s274_s28 = sshrl.u32 %s2060_s11, 3  ;;  %s265_s24 = sadd.s32 %s1962_s22, %s264_s29 }
  0xba   : >> { %s242_s3 = sshrl.u32 %s241_s5, 3  ;;  %s243_s14 = sand.u32 7, %s241_s5  }
  0xbb   : >> { %s1070_s6 = sshll.u32 %s242_s3, 4  ;;  %s266_s7 = sadd.s32 %s1073_s10, %s265_s24 }
  0xbc   : >> { %s245_s1 = sadd.s32 %s1070_s6, %s243_s14  ;;  %s2069_s0 = sld [smem:[#allocation5 + %s266_s7]] }
  0xbd   : >> { %s1071_s23 = sshll.u32 %s245_s1, 4  ;;  %s275_s17 = sand.u32 7, %s2060_s11  }
  0xbe   : >> { %s247_s30 = scalar_lea.hbm %s2608_s2, %s1071_s23 }
  0xbf   : >> { %s1384_s27 = scalar_lea.hbm %s247_s30, 32  ;;  %p1387_p2 = scmp.lt.s32.totalorder %s247_s30, %s2608_s2 }
  0xc0   : >> { %p1385_p1 = scmp.ne.s32.totalorder %s247_s30, %s1384_s27  ;;  %p1388_p3 = scmp.lt.s32.totalorder %s1982_s4, %s1384_s27 }
  0xc2   : >> { %p1389_p5 = por %p1388_p3, %p1387_p2 }
  0xc4   : >> { %p1390_p7 = pnand %p1389_p5, %p1385_p1 }
  0xc6   : >> { %1393 = shalt.err (!%p1390_p7)  }
  0xc7   : >> { %s1394_s5 = scalar_lea.vmem %s2064_s25, 32  ;;  %p1399_p6 = scmp.lt.s32.totalorder %s2064_s25, %s1990_s18 }
  0xc8   : >> { %p1395_p9 = scmp.ne.s32.totalorder %s2064_s25, %s1394_s5  ;;  %p1400_p8 = scmp.lt.s32.totalorder %s1993_s19, %s1394_s5 }
  0xca   : >> { %p1401_p10 = por %p1400_p8, %p1399_p6 }
  0xcc   : >> { %p1402_p11 = pnand %p1401_p10, %p1395_p9 }
  0xce   : >> { %1405 = shalt.err (!%p1402_p11)  }
  0xcf   : >> { %257 = dma.hbm_to_vmem [thread:$0]  %s247_s30, 32, %s2064_s25, [#allocation3], %s2676_s20, %s2676_s20, %s2675_s21 }
  0xd0   : >> { %s1076_s26 = sshll.u32 %s274_s28, 4  ;;  %s2091_s27 = sadd.s32 5, %s1956_s16 }
  0xd1   : >> { %s277_s10 = sadd.s32 %s1076_s26, %s275_s17  ;;  %s285_s29 = sshra.s32 %s2091_s27, 7 }
  0xd2   : >> { %s2095_s3 = sadd.s32 %s1953_s15, %s285_s29  ;;  %s268_s14 = sshrl.u32 %s2069_s0, 3 }
  0xd3   : >> { %s269_s6 = sand.u32 7, %s2069_s0   ;;  %s1074_s24 = sshll.u32 %s268_s14, 4 }
  0xd4   : >> { %s278_s1 = scalar_lea.vmem [#allocation2], %s277_s10  ;;  %s271_s23 = sadd.s32 %s1074_s24, %s269_s6 }
  0xd5   : >> { %s280_s7 = sshll.u32 %s278_s1, 4  ;;  %s1075_s25 = sshll.u32 %s271_s23, 4  ;;  %s281_s7 = int_to_ptr.vmem [resolvable:$true] %s280_s7 }
  0xd6   : >> { %s1077_s11 = sshll.u32 %s2095_s3, 8  ;;  %s273_s8 = scalar_lea.hbm %s2608_s2, %s1075_s25 }
  0xd7   : >> { %s290_s30 = sand.u32 127, %s2091_s27  ;;  %s1406_s17 = scalar_lea.hbm %s273_s8, 32 }
  0xd8   : >> { %p1407_p12 = scmp.ne.s32.totalorder %s273_s8, %s1406_s17  ;;  %p1409_p0 = scmp.lt.s32.totalorder %s273_s8, %s2608_s2 }
  0xd9   : >> { %p1410_p1 = scmp.lt.s32.totalorder %s1982_s4, %s1406_s17 }
  0xdb   : >> { %p1411_p2 = por %p1410_p1, %p1409_p0 }
  0xdd   : >> { %p1412_p3 = pnand %p1411_p2, %p1407_p12 }
  0xdf   : >> { %1415 = shalt.err (!%p1412_p3)  }
  0xe0   : >> { %s1416_s0 = scalar_lea.vmem %s281_s7, 32  ;;  %p1421_p7 = scmp.lt.s32.totalorder %s281_s7, %s1990_s18 }
  0xe1   : >> { %p1417_p5 = scmp.ne.s32.totalorder %s281_s7, %s1416_s0  ;;  %p1422_p9 = scmp.lt.s32.totalorder %s1993_s19, %s1416_s0 }
  0xe3   : >> { %p1423_p6 = por %p1422_p9, %p1421_p7 }
  0xe5   : >> { %p1424_p8 = pnand %p1423_p6, %p1417_p5 }
  0xe7   : >> { %1427 = shalt.err (!%p1424_p8)  }
  0xe8   : >> { %283 = dma.hbm_to_vmem [thread:$0]  %s273_s8, 32, %s281_s7, [#allocation3], %s2676_s20, %s2676_s20, %s2675_s21 }
  0xe9   : >> { %s291_s26 = sadd.s32 %s1962_s22, %s290_s30  ;;  %s300_s10 = sshrl.u32 %s2091_s27, 3 }
  0xea   : >> { %s292_s29 = sadd.s32 %s1077_s11, %s291_s26  ;;  %s301_s3 = sand.u32 7, %s2091_s27  }
  0xeb   : >> { %s293_s14 = sld [smem:[#allocation5 + %s292_s29]]  ;;  %s1080_s6 = sshll.u32 %s300_s10, 4 }
  0xec   : >> { %s303_s24 = sadd.s32 %s1080_s6, %s301_s3  ;;  %s2117_s1 = sadd.s32 6, %s1956_s16 }
  0xed   : >> { %s311_s23 = sshra.s32 %s2117_s1, 7  ;;  %s304_s25 = scalar_lea.vmem [#allocation2], %s303_s24 }
  0xee   : >> { %s306_s28 = sshll.u32 %s304_s25, 4  ;;  %s313_s9 = sadd.s32 %s1953_s15, %s311_s23  ;;  %s2121_s28 = int_to_ptr.vmem [resolvable:$true] %s306_s28 }
  0xef   : >> { %s1081_s7 = sshll.u32 %s313_s9, 8  ;;  %s316_s11 = sand.u32 127, %s2117_s1 }
  0xf0   : >> { %s326_s27 = sshrl.u32 %s2117_s1, 3  ;;  %s317_s12 = sadd.s32 %s1962_s22, %s316_s11 }
  0xf1   : >> { %s294_s8 = sshrl.u32 %s293_s14, 3  ;;  %s295_s30 = sand.u32 7, %s293_s14  }
  0xf2   : >> { %s1078_s17 = sshll.u32 %s294_s8, 4  ;;  %s318_s0 = sadd.s32 %s1081_s7, %s317_s12 }
  0xf3   : >> { %s297_s5 = sadd.s32 %s1078_s17, %s295_s30  ;;  %s2126_s10 = sld [smem:[#allocation5 + %s318_s0]] }
  0xf4   : >> { %s1079_s26 = sshll.u32 %s297_s5, 4  ;;  %s327_s24 = sand.u32 7, %s2117_s1  }
  0xf5   : >> { %s299_s6 = scalar_lea.hbm %s2608_s2, %s1079_s26 }
  0xf6   : >> { %s1428_s23 = scalar_lea.hbm %s299_s6, 32  ;;  %p1431_p11 = scmp.lt.s32.totalorder %s299_s6, %s2608_s2 }
  0xf7   : >> { %p1429_p10 = scmp.ne.s32.totalorder %s299_s6, %s1428_s23  ;;  %p1432_p12 = scmp.lt.s32.totalorder %s1982_s4, %s1428_s23 }
  0xf9   : >> { %p1433_p0 = por %p1432_p12, %p1431_p11 }
  0xfb   : >> { %p1434_p1 = pnand %p1433_p0, %p1429_p10 }
  0xfd   : >> { %1437 = shalt.err (!%p1434_p1)  }
  0xfe   : >> { %s1438_s14 = scalar_lea.vmem %s2121_s28, 32  ;;  %p1443_p3 = scmp.lt.s32.totalorder %s2121_s28, %s1990_s18 }
  0xff   : >> { %p1439_p2 = scmp.ne.s32.totalorder %s2121_s28, %s1438_s14  ;;  %p1444_p5 = scmp.lt.s32.totalorder %s1993_s19, %s1438_s14 }
 0x101   : >> { %p1445_p7 = por %p1444_p5, %p1443_p3 }
 0x103   : >> { %p1446_p9 = pnand %p1445_p7, %p1439_p2 }
 0x105   : >> { %1449 = shalt.err (!%p1446_p9)  }
 0x106   : >> { %309 = dma.hbm_to_vmem [thread:$0]  %s299_s6, 32, %s2121_s28, [#allocation3], %s2676_s20, %s2676_s20, %s2675_s21 }
 0x107   : >> { %s1084_s7 = sshll.u32 %s326_s27, 4  ;;  %s2148_s11 = sadd.s32 7, %s1956_s16 }
 0x108   : >> { %s329_s8 = sadd.s32 %s1084_s7, %s327_s24  ;;  %s337_s30 = sshra.s32 %s2148_s11, 7 }
 0x109   : >> { %s2152_s17 = sadd.s32 %s1953_s15, %s337_s30  ;;  %s320_s12 = sshrl.u32 %s2126_s10, 3 }
 0x10a   : >> { %s321_s5 = sand.u32 7, %s2126_s10   ;;  %s1082_s0 = sshll.u32 %s320_s12, 4 }
 0x10b   : >> { %s330_s26 = scalar_lea.vmem [#allocation2], %s329_s8  ;;  %s323_s3 = sadd.s32 %s1082_s0, %s321_s5 }
 0x10c   : >> { %s332_s29 = sshll.u32 %s330_s26, 4  ;;  %s1083_s28 = sshll.u32 %s323_s3, 4  ;;  %s333_s29 = int_to_ptr.vmem [resolvable:$true] %s332_s29 }
 0x10d   : >> { %s1085_s1 = sshll.u32 %s2152_s17, 8  ;;  %s325_s6 = scalar_lea.hbm %s2608_s2, %s1083_s28 }
 0x10e   : >> { %s342_s23 = sand.u32 127, %s2148_s11  ;;  %s1450_s24 = scalar_lea.hbm %s325_s6, 32 }
 0x10f   : >> { %p1451_p6 = scmp.ne.s32.totalorder %s325_s6, %s1450_s24  ;;  %p1453_p8 = scmp.lt.s32.totalorder %s325_s6, %s2608_s2 }
 0x110   : >> { %p1454_p10 = scmp.lt.s32.totalorder %s1982_s4, %s1450_s24 }
 0x112   : >> { %p1455_p11 = por %p1454_p10, %p1453_p8 }
 0x114   : >> { %p1456_p12 = pnand %p1455_p11, %p1451_p6 }
 0x116   : >> { %1459 = shalt.err (!%p1456_p12)  }
 0x117   : >> { %s1460_s10 = scalar_lea.vmem %s333_s29, 32  ;;  %p1465_p1 = scmp.lt.s32.totalorder %s333_s29, %s1990_s18 }
 0x118   : >> { %p1461_p0 = scmp.ne.s32.totalorder %s333_s29, %s1460_s10  ;;  %p1466_p2 = scmp.lt.s32.totalorder %s1993_s19, %s1460_s10 }
 0x11a   : >> { %p1467_p3 = por %p1466_p2, %p1465_p1 }
 0x11c   : >> { %p1468_p5 = pnand %p1467_p3, %p1461_p0 }
 0x11e   : >> { %1471 = shalt.err (!%p1468_p5)  }
 0x11f   : >> { %335 = dma.hbm_to_vmem [thread:$0]  %s325_s6, 32, %s333_s29, [#allocation3], %s2676_s20, %s2676_s20, %s2675_s21 }
 0x120   : >> { %s343_s9 = sadd.s32 %s1962_s22, %s342_s23  ;;  %s352_s14 = sshrl.u32 %s2148_s11, 3 }
 0x121   : >> { %s344_s7 = sadd.s32 %s1085_s1, %s343_s9  ;;  %s353_s8 = sand.u32 7, %s2148_s11  }
 0x122   : >> { %s345_s30 = sld [smem:[#allocation5 + %s344_s7]]  ;;  %s1088_s17 = sshll.u32 %s352_s14, 4 }
 0x123   : >> { %s355_s12 = sadd.s32 %s1088_s17, %s353_s8 }
 0x124   : >> { %s356_s5 = scalar_lea.vmem [#allocation2], %s355_s12 }
 0x125   : >> { %s358_s0 = sshll.u32 %s356_s5, 4  ;;  %s359_s0 = int_to_ptr.vmem [resolvable:$true] %s358_s0 }
 0x128   : >> { %s346_s26 = sshrl.u32 %s345_s30, 3  ;;  %s347_s3 = sand.u32 7, %s345_s30  }
 0x129   : >> { %s1086_s28 = sshll.u32 %s346_s26, 4 }
 0x12a   : >> { %s349_s27 = sadd.s32 %s1086_s28, %s347_s3 }
 0x12b   : >> { %s1087_s16 = sshll.u32 %s349_s27, 4 }
 0x12c   : >> { %s351_s29 = scalar_lea.hbm %s2608_s2, %s1087_s16 }
 0x12d   : >> { %s1472_s22 = scalar_lea.hbm %s351_s29, 32  ;;  %p1475_p9 = scmp.lt.s32.totalorder %s351_s29, %s2608_s2 }
 0x12e   : >> { %p1473_p7 = scmp.ne.s32.totalorder %s351_s29, %s1472_s22  ;;  %p1476_p6 = scmp.lt.s32.totalorder %s1982_s4, %s1472_s22 }
 0x130   : >> { %p1477_p8 = por %p1476_p6, %p1475_p9 }
 0x132   : >> { %p1478_p10 = pnand %p1477_p8, %p1473_p7 }
 0x134   : >> { %1481 = shalt.err (!%p1478_p10)  }
 0x135   : >> { %s1482_s6 = scalar_lea.vmem %s359_s0, 32  ;;  %p1487_p12 = scmp.lt.s32.totalorder %s359_s0, %s1990_s18 }
 0x136   : >> { %p1483_p11 = scmp.ne.s32.totalorder %s359_s0, %s1482_s6  ;;  %p1488_p0 = scmp.lt.s32.totalorder %s1993_s19, %s1482_s6 }
 0x138   : >> { %p1489_p1 = por %p1488_p0, %p1487_p12 }
 0x13a   : >> { %p1490_p2 = pnand %p1489_p1, %p1483_p11 }
 0x13c   : >> { %1493 = shalt.err (!%p1490_p2)  }
 0x13d   : >> { %361 = dma.hbm_to_vmem [thread:$0]  %s351_s29, 32, %s359_s0, [#allocation3], %s2676_s20, %s2676_s20, %s2675_s21 }
 0x13e   : >> { %s147_s13 = sadd.s32 1, %s1786_s13  }
 0x13f   : >> { %p144_p3 = scmp.ge.s32.totalorder %s147_s13, 16  }
 0x141   : > { %146 = sbr.rel (!%p144_p3) target bundleno = 81 (0x51), region = 127 }
 0x146 PF: > { %s2677_s4 = sld [smem:[#allocation34_spill]] }
 0x14c   : > { %s362_s23 = sadd.s32 1, %s2677_s4 }
 0x14d   : > { %p1089_p5 = scmp.ge.s32.totalorder %s362_s23, 2 }
 0x14f   : > { %366 = sbr.rel (%p1089_p5) target bundleno = 625 (0x271), region = 43 }
 0x154   : > { %p367_p7 = scmp.lt.s32.totalorder %s362_s23, 0  ;;  %s2678_s18 = sld [smem:[#allocation34_spill]] }
 0x155   : > { %s368_s19 = ssub.s32 0, %s362_s23  ;;  %s2194_s13 = smov 0  }
 0x156   : > { %s1090_s15 = smin.u32 %s368_s19, %s362_s23 }
 0x157   : > { %s370_s9 = sand.u32 1, %s1090_s15  }
 0x158   : > { %s371_s21 = ssub.s32 0, %s370_s9 }
 0x159   : > { %s2723_s21 = smov (!%p367_p7, %s371_s21), %s370_s9 }
 0x15a   : > { %s1147_s10 = sshll.u32 %s2678_s18, 7  ;;  %p1092_p9 = scmp.lt.s32.totalorder %s2723_s21, 0 }
 0x15b   : > { %s2190_s14 = sadd.s32 128, %s1147_s10  ;;  %s377_s20 = sadd.s32 2, %s2723_s21 }
 0x15c   : > { %2679 = sst [smem:[#allocation45_spill]] %s2190_s14  ;;  %s2725_s20 = smov (!%p1092_p9, %s377_s20), %s2723_s21 }
 0x15d   : > { %2680 = sst [smem:[#allocation46_spill]] %s2725_s20 }
 0x15e LB: >> { %s2681_s14 = sld [smem:[#allocation45_spill]]  ;;  %s2203_s17 = sshll.u32 %s1790_s13, 3  ;;  %s1790_s13 = sphi %s2194_s13, %s385_s13  }
 0x15f   : >> { %s2682_s20 = sld [smem:[#allocation46_spill]]  ;;  %s409_s24 = sshrl.u32 %s2203_s17, 3 }
 0x160   : >> { %s2683_s7 = sld [smem:[#allocation35_spill]]  ;;  %s410_s29 = sand.u32 7, %s2203_s17  }
 0x161   : >> { %2684 = sst [smem:[#allocation47_spill]] %s1790_s13  ;;  %s1100_s1 = sshll.u32 %s409_s24, 4 }
 0x162   : >> { %2685 = sst [smem:[#allocation48_spill]] %s2203_s17  ;;  %s412_s11 = sadd.s32 %s1100_s1, %s410_s29 }
 0x163   : >> { %s2221_s19 = sadd.s32 1, %s2203_s17 }
 0x164   : >> { %s387_s5 = sadd.s32 %s2681_s14, %s2203_s17  ;;  %s2225_s21 = sadd.s32 %s2681_s14, %s2221_s19 }
 0x165   : >> { %s388_s26 = sshra.s32 %s387_s5, 7  ;;  %s398_s3 = sand.u32 127, %s387_s5 }
 0x166   : >> { %s390_s8 = sshra.s32 %s2683_s7, 1  ;;  %s396_s12 = sand.u32 1, %s2683_s7 }
 0x167   : >> { %s2200_s30 = sshll.u32 %s390_s8, 1  ;;  %s2208_s0 = sshll.u32 %s396_s12, 7 }
 0x168   : >> { %s393_s28 = sadd.s32 %s2200_s30, %s388_s26  ;;  %s400_s27 = sadd.s32 %s2208_s0, %s398_s3 }
 0x169   : >> { %s1096_s16 = sshll.u32 %s393_s28, 8  ;;  %s2215_s6 = sshll.u32 %s2682_s20, 8 }
 0x16a   : >> { %s401_s25 = sadd.s32 %s1096_s16, %s400_s27  ;;  %2686 = sst [smem:[#allocation49_spill]] %s2215_s6 }
 0x16b   : >> { %s402_s22 = sld [smem:[#allocation5 + %s401_s25]]  ;;  %s414_s4 = sadd.s32 %s2215_s6, %s412_s11 }
 0x16c   : >> { %s415_s23 = scalar_lea.vmem [#allocation2], %s414_s4  ;;  %s424_s8 = sshra.s32 %s2225_s21, 7 }
 0x16d   : >> { %s418_s18 = sshll.u32 %s415_s23, 4  ;;  %s2229_s5 = sadd.s32 %s2200_s30, %s424_s8  ;;  %s2218_s18 = int_to_ptr.vmem [resolvable:$true] %s418_s18 }
 0x16e   : >> { %s1102_s27 = sshll.u32 %s2229_s5, 8  ;;  %s2236_s16 = scalar_lea.sflag [#allocation3], %s2682_s20 }
 0x171   : >> { %s403_s15 = sshrl.u32 %s402_s22, 3  ;;  %s404_s10 = sand.u32 7, %s402_s22  }
 0x172   : >> { %s1098_s9 = sshll.u32 %s403_s15, 4  ;;  %s2241_s22 = scalar_lea.hbm %s2608_s2, 16384 }
 0x173   : >> { %s406_s7 = sadd.s32 %s1098_s9, %s404_s10 }
 0x174   : >> { %s1099_s12 = sshll.u32 %s406_s7, 4 }
 0x175   : >> { %s408_s28 = scalar_lea.hbm %s2608_s2, %s1099_s12 }
 0x176   : >> { %s1494_s24 = scalar_lea.hbm %s408_s28, 32  ;;  %p1497_p8 = scmp.lt.s32.totalorder %s408_s28, %s2608_s2 }
 0x177   : >> { %p1495_p6 = scmp.ne.s32.totalorder %s408_s28, %s1494_s24  ;;  %p1498_p10 = scmp.lt.s32.totalorder %s2241_s22, %s1494_s24 }
 0x179   : >> { %p1499_p11 = por %p1498_p10, %p1497_p8 }
 0x17b   : >> { %p1500_p12 = pnand %p1499_p11, %p1495_p6 }
 0x17d   : >> { %1503 = shalt.err (!%p1500_p12)  }
 0x17e   : >> { %s1504_s4 = scalar_lea.vmem %s2218_s18, 32  ;;  %s1804_s23 = smov [#allocation2]  }
 0x17f   : >> { %p1505_p0 = scmp.ne.s32.totalorder %s2218_s18, %s1504_s4  ;;  %s1506_s15 = sshll.u32 %s1804_s23, 4  ;;  %s2249_s15 = int_to_ptr.vmem [resolvable:$false] %s1506_s15 }
 0x180   : >> { %2687 = sst [smem:[#allocation50_spill]] %s2249_s15  ;;  %s2252_s10 = scalar_lea.vmem %s2249_s15, 8192 }
 0x181   : >> { %2688 = sst [smem:[#allocation51_spill]] %s2252_s10  ;;  %p1509_p1 = scmp.lt.s32.totalorder %s2218_s18, %s2249_s15 }
 0x182   : >> { %p1510_p2 = scmp.lt.s32.totalorder %s2252_s10, %s1504_s4 }
 0x184   : >> { %p1511_p3 = por %p1510_p2, %p1509_p1 }
 0x186   : >> { %p1512_p5 = pnand %p1511_p3, %p1505_p0 }
 0x188   : >> { %1515 = shalt.err (!%p1512_p5)  }
 0x189   : >> { %s2638_s9 = smov 128   ;;  %s2640_s7 = smov 1  }
 0x18a   : >> { %421 = dma.hbm_to_vmem [thread:$0]  %s408_s28, 32, %s2218_s18, %s2236_s16, %s2638_s9, %s2638_s9, %s2640_s7 }
 0x18b   : >> { %s429_s8 = sand.u32 127, %s2225_s21  ;;  %s439_s12 = sshrl.u32 %s2221_s19, 3 }
 0x18c   : >> { %s430_s5 = sadd.s32 %s2208_s0, %s429_s8  ;;  %s440_s26 = sand.u32 7, %s2221_s19  }
 0x18d   : >> { %s431_s3 = sadd.s32 %s1102_s27, %s430_s5  ;;  %s1105_s24 = sshll.u32 %s439_s12, 4 }
 0x18e   : >> { %s432_s25 = sld [smem:[#allocation5 + %s431_s3]]  ;;  %s442_s29 = sadd.s32 %s1105_s24, %s440_s26 }
 0x18f   : >> { %s443_s1 = sadd.s32 %s2215_s6, %s442_s29  ;;  %s2268_s11 = sadd.s32 2, %s2203_s17 }
 0x190   : >> { %s451_s4 = sadd.s32 %s2681_s14, %s2268_s11  ;;  %s444_s23 = scalar_lea.vmem [#allocation2], %s443_s1 }
 0x191   : >> { %s446_s20 = sshll.u32 %s444_s23, 4  ;;  %s452_s13 = sshra.s32 %s451_s4, 7  ;;  %s2272_s20 = int_to_ptr.vmem [resolvable:$true] %s446_s20 }
 0x192   : >> { %s454_s18 = sadd.s32 %s2200_s30, %s452_s13  ;;  %s457_s19 = sand.u32 127, %s451_s4 }
 0x193   : >> { %s1106_s21 = sshll.u32 %s454_s18, 8  ;;  %s458_s12 = sadd.s32 %s2208_s0, %s457_s19 }
 0x194   : >> { %s433_s28 = sshrl.u32 %s432_s25, 3  ;;  %s434_s27 = sand.u32 7, %s432_s25  }
 0x195   : >> { %s1103_s8 = sshll.u32 %s433_s28, 4  ;;  %s459_s26 = sadd.s32 %s1106_s21, %s458_s12 }
 0x196   : >> { %s436_s5 = sadd.s32 %s1103_s8, %s434_s27  ;;  %s460_s24 = sld [smem:[#allocation5 + %s459_s26]] }
 0x197   : >> { %s1104_s3 = sshll.u32 %s436_s5, 4  ;;  %s467_s23 = sshrl.u32 %s2268_s11, 3 }
 0x198   : >> { %s438_s1 = scalar_lea.hbm %s2608_s2, %s1104_s3 }
 0x199   : >> { %s1516_s7 = scalar_lea.hbm %s438_s1, 32  ;;  %p1519_p9 = scmp.lt.s32.totalorder %s438_s1, %s2608_s2 }
 0x19a   : >> { %p1517_p7 = scmp.ne.s32.totalorder %s438_s1, %s1516_s7  ;;  %p1520_p6 = scmp.lt.s32.totalorder %s2241_s22, %s1516_s7 }
 0x19c   : >> { %p1521_p8 = por %p1520_p6, %p1519_p9 }
 0x19e   : >> { %p1522_p10 = pnand %p1521_p8, %p1517_p7 }
 0x1a0   : >> { %1525 = shalt.err (!%p1522_p10)  }
 0x1a1   : >> { %s1526_s25 = scalar_lea.vmem %s2272_s20, 32  ;;  %p1531_p12 = scmp.lt.s32.totalorder %s2272_s20, %s2249_s15 }
 0x1a2   : >> { %p1527_p11 = scmp.ne.s32.totalorder %s2272_s20, %s1526_s25  ;;  %p1532_p0 = scmp.lt.s32.totalorder %s2252_s10, %s1526_s25 }
 0x1a4   : >> { %p1533_p1 = por %p1532_p0, %p1531_p12 }
 0x1a6   : >> { %p1534_p2 = pnand %p1533_p1, %p1527_p11 }
 0x1a8   : >> { %1537 = shalt.err (!%p1534_p2)  }
 0x1a9   : >> { %s2689_s9 = smov 1   ;;  %s2690_s4 = smov 128  }
 0x1aa   : >> { %s2691_s14 = sld [smem:[#allocation45_spill]]  ;;  %s468_s7 = sand.u32 7, %s2268_s11  }
 0x1ab   : >> { %449 = dma.hbm_to_vmem [thread:$0]  %s438_s1, 32, %s2272_s20, %s2236_s16, %s2690_s4, %s2690_s4, %s2689_s9 }
 0x1ac   : >> { %s1109_s18 = sshll.u32 %s467_s23, 4  ;;  %s2296_s19 = sadd.s32 3, %s2203_s17 }
 0x1ad   : >> { %s470_s21 = sadd.s32 %s1109_s18, %s468_s7  ;;  %s461_s8 = sshrl.u32 %s460_s24, 3 }
 0x1ae   : >> { %s471_s28 = sadd.s32 %s2215_s6, %s470_s21  ;;  %s462_s12 = sand.u32 7, %s460_s24  }
 0x1af   : >> { %s1107_s5 = sshll.u32 %s461_s8, 4  ;;  %s472_s3 = scalar_lea.vmem [#allocation2], %s471_s28 }
 0x1b0   : >> { %s2301_s27 = sadd.s32 %s2691_s14, %s2296_s19  ;;  %s464_s26 = sadd.s32 %s1107_s5, %s462_s12 }
 0x1b1   : >> { %s474_s29 = sshll.u32 %s472_s3, 4  ;;  %s1108_s13 = sshll.u32 %s464_s26, 4  ;;  %s475_s29 = int_to_ptr.vmem [resolvable:$true] %s474_s29 }
 0x1b2   : >> { %s466_s1 = scalar_lea.hbm %s2608_s2, %s1108_s13  ;;  %s480_s23 = sshra.s32 %s2301_s27, 7 }
 0x1b3   : >> { %s1538_s25 = scalar_lea.hbm %s466_s1, 32  ;;  %p1541_p5 = scmp.lt.s32.totalorder %s466_s1, %s2608_s2 }
 0x1b4   : >> { %p1539_p3 = scmp.ne.s32.totalorder %s466_s1, %s1538_s25  ;;  %p1542_p7 = scmp.lt.s32.totalorder %s2241_s22, %s1538_s25 }
 0x1b6   : >> { %p1543_p9 = por %p1542_p7, %p1541_p5 }
 0x1b8   : >> { %p1544_p6 = pnand %p1543_p9, %p1539_p3 }
 0x1ba   : >> { %1547 = shalt.err (!%p1544_p6)  }
 0x1bb   : >> { %s1548_s24 = scalar_lea.vmem %s475_s29, 32  ;;  %p1553_p10 = scmp.lt.s32.totalorder %s475_s29, %s2249_s15 }
 0x1bc   : >> { %p1549_p8 = scmp.ne.s32.totalorder %s475_s29, %s1548_s24  ;;  %p1554_p11 = scmp.lt.s32.totalorder %s2252_s10, %s1548_s24 }
 0x1be   : >> { %p1555_p12 = por %p1554_p11, %p1553_p10 }
 0x1c0   : >> { %p1556_p0 = pnand %p1555_p12, %p1549_p8 }
 0x1c2   : >> { %1559 = shalt.err (!%p1556_p0)  }
 0x1c3   : >> { %477 = dma.hbm_to_vmem [thread:$0]  %s466_s1, 32, %s475_s29, %s2236_s16, %s2690_s4, %s2690_s4, %s2689_s9 }
 0x1c4   : >> { %s482_s21 = sadd.s32 %s2200_s30, %s480_s23  ;;  %s485_s28 = sand.u32 127, %s2301_s27 }
 0x1c5   : >> { %s1110_s8 = sshll.u32 %s482_s21, 8  ;;  %s486_s12 = sadd.s32 %s2208_s0, %s485_s28 }
 0x1c6   : >> { %s487_s5 = sadd.s32 %s1110_s8, %s486_s12  ;;  %s495_s26 = sshrl.u32 %s2296_s19, 3 }
 0x1c7   : >> { %s488_s3 = sld [smem:[#allocation5 + %s487_s5]]  ;;  %s496_s13 = sand.u32 7, %s2296_s19  }
 0x1c8   : >> { %s1113_s20 = sshll.u32 %s495_s26, 4  ;;  %s2323_s11 = sadd.s32 4, %s2203_s17 }
 0x1c9   : >> { %s498_s25 = sadd.s32 %s1113_s20, %s496_s13  ;;  %s507_s7 = sadd.s32 %s2691_s14, %s2323_s11 }
 0x1ca   : >> { %s499_s18 = sadd.s32 %s2215_s6, %s498_s25  ;;  %s508_s24 = sshra.s32 %s507_s7, 7 }
 0x1cb   : >> { %s510_s10 = sadd.s32 %s2200_s30, %s508_s24  ;;  %s500_s15 = scalar_lea.vmem [#allocation2], %s499_s18 }
 0x1cc   : >> { %s502_s29 = sshll.u32 %s500_s15, 4  ;;  %s1114_s27 = sshll.u32 %s510_s10, 8  ;;  %s503_s29 = int_to_ptr.vmem [resolvable:$true] %s502_s29 }
 0x1cd   : >> { %s489_s1 = sshrl.u32 %s488_s3, 3  ;;  %s490_s23 = sand.u32 7, %s488_s3  }
 0x1ce   : >> { %s1111_s21 = sshll.u32 %s489_s1, 4  ;;  %s513_s19 = sand.u32 127, %s507_s7 }
 0x1cf   : >> { %s492_s28 = sadd.s32 %s1111_s21, %s490_s23  ;;  %s514_s12 = sadd.s32 %s2208_s0, %s513_s19 }
 0x1d0   : >> { %s1112_s8 = sshll.u32 %s492_s28, 4  ;;  %s515_s20 = sadd.s32 %s1114_s27, %s514_s12 }
 0x1d1   : >> { %s494_s13 = scalar_lea.hbm %s2608_s2, %s1112_s8 }
 0x1d2   : >> { %s1560_s25 = scalar_lea.hbm %s494_s13, 32  ;;  %p1563_p2 = scmp.lt.s32.totalorder %s494_s13, %s2608_s2 }
 0x1d3   : >> { %p1561_p1 = scmp.ne.s32.totalorder %s494_s13, %s1560_s25  ;;  %p1564_p3 = scmp.lt.s32.totalorder %s2241_s22, %s1560_s25 }
 0x1d5   : >> { %p1565_p5 = por %p1564_p3, %p1563_p2 }
 0x1d7   : >> { %p1566_p7 = pnand %p1565_p5, %p1561_p1 }
 0x1d9   : >> { %1569 = shalt.err (!%p1566_p7)  }
 0x1da   : >> { %s1570_s15 = scalar_lea.vmem %s503_s29, 32  ;;  %s2692_s10 = sld [smem:[#allocation50_spill]] }
 0x1db   : >> { %s2693_s3 = sld [smem:[#allocation51_spill]]  ;;  %p1571_p9 = scmp.ne.s32.totalorder %s503_s29, %s1570_s15 }
 0x1e0   : >> { %p1575_p6 = scmp.lt.s32.totalorder %s503_s29, %s2692_s10 }
 0x1e1   : >> { %p1576_p8 = scmp.lt.s32.totalorder %s2693_s3, %s1570_s15 }
 0x1e3   : >> { %p1577_p10 = por %p1576_p8, %p1575_p6 }
 0x1e5   : >> { %p1578_p11 = pnand %p1577_p10, %p1571_p9 }
 0x1e7   : >> { %1581 = shalt.err (!%p1578_p11)  }
 0x1e8   : >> { %505 = dma.hbm_to_vmem [thread:$0]  %s494_s13, 32, %s503_s29, %s2236_s16, %s2690_s4, %s2690_s4, %s2689_s9 }
 0x1e9   : >> { %s516_s7 = sld [smem:[#allocation5 + %s515_s20]]  ;;  %s523_s27 = sshrl.u32 %s2323_s11, 3 }
 0x1ea   : >> { %s524_s1 = sand.u32 7, %s2323_s11   ;;  %s1117_s23 = sshll.u32 %s523_s27, 4 }
 0x1eb   : >> { %s526_s21 = sadd.s32 %s1117_s23, %s524_s1  ;;  %s2346_s28 = sadd.s32 5, %s2203_s17 }
 0x1ec   : >> { %s527_s19 = sadd.s32 %s2215_s6, %s526_s21  ;;  %s535_s8 = sadd.s32 %s2691_s14, %s2346_s28 }
 0x1ed   : >> { %s536_s12 = sshra.s32 %s535_s8, 7  ;;  %s528_s5 = scalar_lea.vmem [#allocation2], %s527_s19 }
 0x1ee   : >> { %s530_s26 = sshll.u32 %s528_s5, 4  ;;  %s2352_s25 = sadd.s32 %s2200_s30, %s536_s12  ;;  %s531_s26 = int_to_ptr.vmem [resolvable:$true] %s530_s26 }
 0x1ef   : >> { %s517_s24 = sshrl.u32 %s516_s7, 3  ;;  %s518_s29 = sand.u32 7, %s516_s7  }
 0x1f0   : >> { %s1115_s13 = sshll.u32 %s517_s24, 4  ;;  %s1118_s20 = sshll.u32 %s2352_s25, 8 }
 0x1f1   : >> { %s520_s11 = sadd.s32 %s1115_s13, %s518_s29  ;;  %s541_s15 = sand.u32 127, %s535_s8 }
 0x1f2   : >> { %s1116_s18 = sshll.u32 %s520_s11, 4  ;;  %s542_s21 = sadd.s32 %s2208_s0, %s541_s15 }
 0x1f3   : >> { %s522_s23 = scalar_lea.hbm %s2608_s2, %s1116_s18 }
 0x1f4   : >> { %s1582_s6 = scalar_lea.hbm %s522_s23, 32  ;;  %p1585_p0 = scmp.lt.s32.totalorder %s522_s23, %s2608_s2 }
 0x1f5   : >> { %p1583_p12 = scmp.ne.s32.totalorder %s522_s23, %s1582_s6  ;;  %p1586_p1 = scmp.lt.s32.totalorder %s2241_s22, %s1582_s6 }
 0x1f7   : >> { %p1587_p2 = por %p1586_p1, %p1585_p0 }
 0x1f9   : >> { %p1588_p3 = pnand %p1587_p2, %p1583_p12 }
 0x1fb   : >> { %1591 = shalt.err (!%p1588_p3)  }
 0x1fc   : >> { %s1592_s7 = scalar_lea.vmem %s531_s26, 32  ;;  %p1597_p7 = scmp.lt.s32.totalorder %s531_s26, %s2692_s10 }
 0x1fd   : >> { %p1593_p5 = scmp.ne.s32.totalorder %s531_s26, %s1592_s7  ;;  %p1598_p9 = scmp.lt.s32.totalorder %s2693_s3, %s1592_s7 }
 0x1ff   : >> { %p1599_p6 = por %p1598_p9, %p1597_p7 }
 0x201   : >> { %p1600_p8 = pnand %p1599_p6, %p1593_p5 }
 0x203   : >> { %1603 = shalt.err (!%p1600_p8)  }
 0x204   : >> { %s2694_s6 = sld [smem:[#allocation49_spill]]  ;;  %s543_s8 = sadd.s32 %s1118_s20, %s542_s21 }
 0x205   : >> { %533 = dma.hbm_to_vmem [thread:$0]  %s522_s23, 32, %s531_s26, %s2236_s16, %s2690_s4, %s2690_s4, %s2689_s9 }
 0x206   : >> { %s551_s12 = sshrl.u32 %s2346_s28, 3  ;;  %s544_s25 = sld [smem:[#allocation5 + %s543_s8]] }
 0x207   : >> { %s552_s24 = sand.u32 7, %s2346_s28   ;;  %s1121_s29 = sshll.u32 %s551_s12, 4 }
 0x208   : >> { %s2372_s13 = sadd.s32 6, %s2203_s17  ;;  %s554_s11 = sadd.s32 %s1121_s29, %s552_s24 }
 0x209   : >> { %s563_s18 = sadd.s32 %s2691_s14, %s2372_s13 }
 0x20a   : >> { %s555_s15 = sadd.s32 %s2694_s6, %s554_s11  ;;  %s564_s27 = sshra.s32 %s563_s18, 7 }
 0x20b   : >> { %s566_s1 = sadd.s32 %s2200_s30, %s564_s27  ;;  %s556_s19 = scalar_lea.vmem [#allocation2], %s555_s15 }
 0x20c   : >> { %s558_s5 = sshll.u32 %s556_s19, 4  ;;  %s1122_s7 = sshll.u32 %s566_s1, 8  ;;  %s559_s5 = int_to_ptr.vmem [resolvable:$true] %s558_s5 }
 0x20d   : >> { %s545_s3 = sshrl.u32 %s544_s25, 3  ;;  %s546_s26 = sand.u32 7, %s544_s25  }
 0x20e   : >> { %s1119_s20 = sshll.u32 %s545_s3, 4  ;;  %s569_s28 = sand.u32 127, %s563_s18 }
 0x20f   : >> { %s548_s23 = sadd.s32 %s1119_s20, %s546_s26  ;;  %s570_s8 = sadd.s32 %s2208_s0, %s569_s28 }
 0x210   : >> { %s1120_s21 = sshll.u32 %s548_s23, 4  ;;  %s571_s29 = sadd.s32 %s1122_s7, %s570_s8 }
 0x211   : >> { %s550_s24 = scalar_lea.hbm %s2608_s2, %s1120_s21 }
 0x212   : >> { %s1604_s11 = scalar_lea.hbm %s550_s24, 32  ;;  %p1607_p11 = scmp.lt.s32.totalorder %s550_s24, %s2608_s2 }
 0x213   : >> { %p1605_p10 = scmp.ne.s32.totalorder %s550_s24, %s1604_s11  ;;  %p1608_p12 = scmp.lt.s32.totalorder %s2241_s22, %s1604_s11 }
 0x215   : >> { %p1609_p0 = por %p1608_p12, %p1607_p11 }
 0x217   : >> { %p1610_p1 = pnand %p1609_p0, %p1605_p10 }
 0x219   : >> { %1613 = shalt.err (!%p1610_p1)  }
 0x21a   : >> { %s1614_s3 = scalar_lea.vmem %s559_s5, 32  ;;  %s2695_s25 = sld [smem:[#allocation51_spill]] }
 0x21b   : >> { %p1615_p2 = scmp.ne.s32.totalorder %s559_s5, %s1614_s3  ;;  %p1619_p3 = scmp.lt.s32.totalorder %s559_s5, %s2692_s10 }
 0x220   : >> { %p1620_p5 = scmp.lt.s32.totalorder %s2695_s25, %s1614_s3 }
 0x222   : >> { %p1621_p7 = por %p1620_p5, %p1619_p3 }
 0x224   : >> { %p1622_p9 = pnand %p1621_p7, %p1615_p2 }
 0x226   : >> { %1625 = shalt.err (!%p1622_p9)  }
 0x227   : >> { %s2696_s17 = sld [smem:[#allocation48_spill]]  ;;  %s579_s1 = sshrl.u32 %s2372_s13, 3 }
 0x228   : >> { %561 = dma.hbm_to_vmem [thread:$0]  %s550_s24, 32, %s559_s5, %s2236_s16, %s2690_s4, %s2690_s4, %s2689_s9 }
 0x229   : >> { %s572_s18 = sld [smem:[#allocation5 + %s571_s29]]  ;;  %s580_s19 = sand.u32 7, %s2372_s13  }
 0x22a   : >> { %s1125_s7 = sshll.u32 %s579_s1, 4 }
 0x22b   : >> { %s582_s26 = sadd.s32 %s1125_s7, %s580_s19 }
 0x22c   : >> { %s583_s23 = sadd.s32 %s2694_s6, %s582_s26 }
 0x22d   : >> { %s2395_s20 = sadd.s32 7, %s2696_s17  ;;  %s584_s8 = scalar_lea.vmem [#allocation2], %s583_s23 }
 0x22e   : >> { %s591_s28 = sadd.s32 %s2691_s14, %s2395_s20  ;;  %s586_s12 = sshll.u32 %s584_s8, 4  ;;  %s587_s12 = int_to_ptr.vmem [resolvable:$true] %s586_s12 }
 0x22f   : >> { %s592_s21 = sshra.s32 %s591_s28, 7  ;;  %s573_s27 = sshrl.u32 %s572_s18, 3 }
 0x230   : >> { %s2401_s11 = sadd.s32 %s2200_s30, %s592_s21  ;;  %s574_s5 = sand.u32 7, %s572_s18  }
 0x231   : >> { %s1123_s24 = sshll.u32 %s573_s27, 4  ;;  %s1126_s29 = sshll.u32 %s2401_s11, 8 }
 0x232   : >> { %s576_s13 = sadd.s32 %s1123_s24, %s574_s5  ;;  %s597_s3 = sand.u32 127, %s591_s28 }
 0x233   : >> { %s1124_s15 = sshll.u32 %s576_s13, 4  ;;  %s598_s14 = sadd.s32 %s2208_s0, %s597_s3 }
 0x234   : >> { %s578_s19 = scalar_lea.hbm %s2608_s2, %s1124_s15 }
 0x235   : >> { %s1626_s7 = scalar_lea.hbm %s578_s19, 32  ;;  %p1629_p8 = scmp.lt.s32.totalorder %s578_s19, %s2608_s2 }
 0x236   : >> { %p1627_p6 = scmp.ne.s32.totalorder %s578_s19, %s1626_s7  ;;  %p1630_p10 = scmp.lt.s32.totalorder %s2241_s22, %s1626_s7 }
 0x238   : >> { %p1631_p11 = por %p1630_p10, %p1629_p8 }
 0x23a   : >> { %p1632_p12 = pnand %p1631_p11, %p1627_p6 }
 0x23c   : >> { %1635 = shalt.err (!%p1632_p12)  }
 0x23d   : >> { %s1636_s30 = scalar_lea.vmem %s587_s12, 32  ;;  %p1641_p1 = scmp.lt.s32.totalorder %s587_s12, %s2692_s10 }
 0x23e   : >> { %p1637_p0 = scmp.ne.s32.totalorder %s587_s12, %s1636_s30  ;;  %p1642_p2 = scmp.lt.s32.totalorder %s2695_s25, %s1636_s30 }
 0x240   : >> { %p1643_p3 = por %p1642_p2, %p1641_p1 }
 0x242   : >> { %p1644_p5 = pnand %p1643_p3, %p1637_p0 }
 0x244   : >> { %1647 = shalt.err (!%p1644_p5)  }
 0x245   : >> { %589 = dma.hbm_to_vmem [thread:$0]  %s578_s19, 32, %s587_s12, %s2236_s16, %s2690_s4, %s2690_s4, %s2689_s9 }
 0x246   : >> { %s599_s0 = sadd.s32 %s1126_s29, %s598_s14  ;;  %s607_s18 = sshrl.u32 %s2395_s20, 3 }
 0x247   : >> { %s600_s28 = sld [smem:[#allocation5 + %s599_s0]]  ;;  %s608_s21 = sand.u32 7, %s2395_s20  }
 0x248   : >> { %s1129_s8 = sshll.u32 %s607_s18, 4 }
 0x249   : >> { %s610_s11 = sadd.s32 %s1129_s8, %s608_s21 }
 0x24a   : >> { %s611_s27 = sadd.s32 %s2694_s6, %s610_s11 }
 0x24b   : >> { %s612_s5 = scalar_lea.vmem [#allocation2], %s611_s27 }
 0x24c   : >> { %s614_s24 = sshll.u32 %s612_s5, 4  ;;  %s615_s24 = int_to_ptr.vmem [resolvable:$true] %s614_s24 }
 0x24d   : >> { %s601_s13 = sshrl.u32 %s600_s28, 3  ;;  %s602_s15 = sand.u32 7, %s600_s28  }
 0x24e   : >> { %s1127_s3 = sshll.u32 %s601_s13, 4 }
 0x24f   : >> { %s604_s17 = sadd.s32 %s1127_s3, %s602_s15 }
 0x250   : >> { %s1128_s1 = sshll.u32 %s604_s17, 4 }
 0x251   : >> { %s606_s12 = scalar_lea.hbm %s2608_s2, %s1128_s1 }
 0x252   : >> { %s1648_s29 = scalar_lea.hbm %s606_s12, 32  ;;  %p1651_p9 = scmp.lt.s32.totalorder %s606_s12, %s2608_s2 }
 0x253   : >> { %p1649_p7 = scmp.ne.s32.totalorder %s606_s12, %s1648_s29  ;;  %p1652_p6 = scmp.lt.s32.totalorder %s2241_s22, %s1648_s29 }
 0x255   : >> { %p1653_p8 = por %p1652_p6, %p1651_p9 }
 0x257   : >> { %p1654_p10 = pnand %p1653_p8, %p1649_p7 }
 0x259   : >> { %1657 = shalt.err (!%p1654_p10)  }
 0x25a   : >> { %s1658_s6 = scalar_lea.vmem %s615_s24, 32  ;;  %p1663_p12 = scmp.lt.s32.totalorder %s615_s24, %s2692_s10 }
 0x25b   : >> { %p1659_p11 = scmp.ne.s32.totalorder %s615_s24, %s1658_s6  ;;  %p1664_p0 = scmp.lt.s32.totalorder %s2695_s25, %s1658_s6 }
 0x25d   : >> { %p1665_p1 = por %p1664_p0, %p1663_p12 }
 0x25f   : >> { %p1666_p2 = pnand %p1665_p1, %p1659_p11 }
 0x261   : >> { %1669 = shalt.err (!%p1666_p2)  }
 0x262   : >> { %617 = dma.hbm_to_vmem [thread:$0]  %s606_s12, 32, %s615_s24, %s2236_s16, %s2690_s4, %s2690_s4, %s2689_s9 }
 0x263   : >> { %s2697_s14 = sld [smem:[#allocation47_spill]] }
 0x269   : >> { %s385_s13 = sadd.s32 1, %s2697_s14  }
 0x26a   : >> { %p382_p3 = scmp.ge.s32.totalorder %s385_s13, 16  }
 0x26c   : > { %384 = sbr.rel (!%p382_p3) target bundleno = 350 (0x15e), region = 138 }
 0x271 PF: > { %s2698_s22 = sld [smem:[#allocation34_spill]]  ;;  %s1792_s16 = smov 0  }
 0x277   : > { %p618_p5 = scmp.lt.s32.totalorder %s2698_s22, 0  ;;  %s619_s10 = ssub.s32 0, %s2698_s22 }
 0x278   : > { %s1130_s25 = smin.u32 %s2698_s22, %s619_s10 }
 0x279   : > { %s621_s23 = sand.u32 1, %s1130_s25  }
 0x27a   : > { %s622_s30 = ssub.s32 0, %s621_s23 }
 0x27b   : > { %s2727_s30 = smov (!%p618_p5, %s622_s30), %s621_s23 }
 0x27c   : > { %p1132_p7 = scmp.lt.s32.totalorder %s2727_s30, 0  ;;  %s628_s0 = sadd.s32 2, %s2727_s30 }
 0x27e   : > { %s2729_s0 = smov (!%p1132_p7, %s628_s0), %s2727_s30 }
 0x27f LB: >> { %s636_s9 = scalar_lea.sflag [#allocation3], %s2729_s0  ;;  %s1794_s16 = sphi %s1792_s16, %s635_s16  }
 0x280   : >> { %1746 = dma.done.wait %s636_s9, 256 }
 0x281   : >> { %1747 = vsyncadd %s636_s9, 4294967040  ;;  %s635_s16 = sadd.s32 1, %s1794_s16  }
 0x282   : >> { %p632_p9 = scmp.ge.s32.totalorder %s635_s16, 16  }
 0x283   : > { %s2699_s4 = sld [smem:[#allocation34_spill]] (%p632_p9)  ;;  %s1150_s28 = sshll.u32 (%p632_p9), %s2729_s0, 8 }
 0x284   : > { %634 = sbr.rel (!%p632_p9) target bundleno = 639 (0x27f), region = 149  ;;  %s2441_s11 = scalar_lea.vmem (%p632_p9), [#allocation2], %s1150_s28 }
 0x285   : > { %v695_v0 = vld [vmem:[%s2441_s11] sm:$0xff] (%p632_p9)  ;;  %v696_v1 = vld [vmem:[%s2441_s11 + $0x8] sm:$0xff] (%p632_p9)  ;;  %v697_v2 = vld [vmem:[%s2441_s11 + $0x10] sm:$0xff] (%p632_p9)  ;;  %s2700_s5 = sld [smem:[#allocation44_spill]] (%p632_p9)  ;;  %s1807_s10 = smov (%p632_p9), [#allocation10]  }
 0x286   : > { %v698_v3 = vld [vmem:[%s2441_s11 + $0x18] sm:$0xff] (%p632_p9)  ;;  %v699_v4 = vld [vmem:[%s2441_s11 + $0x20] sm:$0xff] (%p632_p9)  ;;  %v700_v5 = vld [vmem:[%s2441_s11 + $0x28] sm:$0xff] (%p632_p9)  ;;  %s2701_s24 = sld [smem:[#allocation35_spill]] (%p632_p9)  ;;  %s1674_s25 = sshll.u32 (%p632_p9), %s1807_s10, 4  ;;  %s1675_s25 = int_to_ptr.vmem [resolvable:$false] %s1674_s25 }
 0x287   : > { %v701_v19 = vld [vmem:[%s2441_s11 + $0x30] sm:$0xff] (%p632_p9)  ;;  %v702_v22 = vld [vmem:[%s2441_s11 + $0x38] sm:$0xff] (%p632_p9)  ;;  %v703_v24 = vld [vmem:[%s2441_s11 + $0x40] sm:$0xff] (%p632_p9)  ;;  %s2702_s7 = sld [smem:[#allocation32_spill]] (%p632_p9)  ;;  %s1676_s23 = scalar_lea.vmem (%p632_p9), %s1675_s25, 8192 }
 0x288   : > { %v704_v28 = vld [vmem:[%s2441_s11 + $0x48] sm:$0xff] (%p632_p9)  ;;  %v705_v31 = vld [vmem:[%s2441_s11 + $0x50] sm:$0xff] (%p632_p9)  ;;  %v706_v33 = vld [vmem:[%s2441_s11 + $0x58] sm:$0xff] (%p632_p9)  ;;  %s2704_s19 = sld [smem:[#allocation53_spill]] (%p632_p9) }
 0x289   : > { %s1133_s18 = sshll.u32 %s2699_s4, 7  ;;  %v707_v37 = vld [vmem:[%s2441_s11 + $0x60] sm:$0xff]  ;;  %v708_v40 = vld [vmem:[%s2441_s11 + $0x68] sm:$0xff]  ;;  %v709_v42 = vld [vmem:[%s2441_s11 + $0x70] sm:$0xff]  ;;  %s1151_s13 = sshll.u32 %s2699_s4, 5 }
 0x28a   : > { %s655_s21 = sshra.s32 %s1133_s18, 3  ;;  %v710_v46 = vld [vmem:[%s2441_s11 + $0x78] sm:$0xff]  ;;  %v711_v49 = vld [vmem:[%s2441_s11 + $0x80] sm:$0xff]  ;;  %v712_v51 = vld [vmem:[%s2441_s11 + $0x88] sm:$0xff] }
 0x28b   : > { %s1149_s8 = sshll.u32 %s655_s21, 4  ;;  %v713_v55 = vld [vmem:[%s2441_s11 + $0x90] sm:$0xff]  ;;  %v714_v58 = vld [vmem:[%s2441_s11 + $0x98] sm:$0xff]  ;;  %v715_v60 = vld [vmem:[%s2441_s11 + $0xa0] sm:$0xff]  ;;  %s808_s17 = sshll.u32 %s2700_s5, 4  ;;  %s2543_s17 = int_to_ptr.vmem [resolvable:$true] %s808_s17 }
 0x28c   : > { %s2449_s27 = scalar_lea.vmem [#allocation7], %s1149_s8  ;;  %s1141_s15 = sshll.u32 %s2701_s24, 6 }
 0x28d   : > { %v660_v6 = vld [vmem:[%s2449_s27] sm:$0xff]  ;;  %v661_v7 = vld [vmem:[%s2449_s27 + $0x8] sm:$0xff]  ;;  %v662_v8 = vld [vmem:[%s2449_s27 + $0x10] sm:$0xff]  ;;  %s2519_s3 = sadd.s32 %s1151_s13, %s1141_s15  ;;  %s2705_s6 = sand.u32 1, %s2702_s7  }
 0x28e   : > { %v727_v9 = vadd.f32 %v695_v0, %v660_v6  ;;  %v728_v10 = vadd.f32 %v696_v1, %v661_v7  ;;  %v729_v11 = vadd.f32 %v697_v2, %v662_v8  ;;  %v663_v12 = vld [vmem:[%s2449_s27 + $0x18] sm:$0xff]  ;;  %v664_v13 = vld [vmem:[%s2449_s27 + $0x20] sm:$0xff]  ;;  %v665_v14 = vld [vmem:[%s2449_s27 + $0x28] sm:$0xff]  ;;  %s1142_s1 = sshll.u32 %s2519_s3, 7  ;;  %s2556_s14 = scalar_lea.sflag [#allocation9], %s2705_s6 }
 0x28f   : > { %v730_v15 = vadd.f32 %v698_v3, %v663_v12  ;;  %v731_v16 = vadd.f32 %v699_v4, %v664_v13  ;;  %v732_v17 = vadd.f32 %v700_v5, %v665_v14  ;;  %v666_v18 = vld [vmem:[%s2449_s27 + $0x30] sm:$0xff]  ;;  %v667_v20 = vld [vmem:[%s2449_s27 + $0x38] sm:$0xff]  ;;  %v668_v23 = vld [vmem:[%s2449_s27 + $0x40] sm:$0xff]  ;;  %s2550_s20 = scalar_lea.hbm %s2704_s19, %s1142_s1  ;;  %s1670_s22 = scalar_lea.vmem %s2543_s17, 4096 }
 0x290   : > { %759 = vst [vmem:[%s2700_s5] sm:$0xff] %v727_v9  ;;  %760 = vst [vmem:[%s2700_s5 + $0x8] sm:$0xff] %v728_v10  ;;  %v733_v21 = vadd.f32 %v701_v19, %v666_v18  ;;  %v734_v25 = vadd.f32 %v702_v22, %v667_v20  ;;  %v735_v26 = vadd.f32 %v703_v24, %v668_v23  ;;  %v669_v27 = vld [vmem:[%s2449_s27 + $0x48] sm:$0xff]  ;;  %v670_v29 = vld [vmem:[%s2449_s27 + $0x50] sm:$0xff]  ;;  %p1671_p6 = scmp.ne.s32.totalorder %s2543_s17, %s1670_s22  ;;  %p1677_p11 = scmp.lt.s32.totalorder %s2543_s17, %s1675_s25 }
 0x291   : > { %761 = vst [vmem:[%s2700_s5 + $0x10] sm:$0xff] %v729_v11  ;;  %762 = vst [vmem:[%s2700_s5 + $0x18] sm:$0xff] %v730_v15  ;;  %v736_v30 = vadd.f32 %v704_v28, %v669_v27  ;;  %v671_v32 = vld [vmem:[%s2449_s27 + $0x58] sm:$0xff]  ;;  %v737_v34 = vadd.f32 %v705_v31, %v670_v29  ;;  %v672_v36 = vld [vmem:[%s2449_s27 + $0x60] sm:$0xff]  ;;  %p1678_p12 = scmp.lt.s32.totalorder %s1676_s23, %s1670_s22 }
 0x292   : > { %763 = vst [vmem:[%s2700_s5 + $0x20] sm:$0xff] %v731_v16  ;;  %764 = vst [vmem:[%s2700_s5 + $0x28] sm:$0xff] %v732_v17  ;;  %v738_v35 = vadd.f32 %v706_v33, %v671_v32  ;;  %v673_v38 = vld [vmem:[%s2449_s27 + $0x68] sm:$0xff]  ;;  %v739_v39 = vadd.f32 %v707_v37, %v672_v36  ;;  %v674_v41 = vld [vmem:[%s2449_s27 + $0x70] sm:$0xff]  ;;  %p1672_p8 = pnand %p1671_p6, %p1893_p13 }
 0x293   : > { %765 = vst [vmem:[%s2700_s5 + $0x30] sm:$0xff] %v733_v21  ;;  %766 = vst [vmem:[%s2700_s5 + $0x38] sm:$0xff] %v734_v25  ;;  %v740_v43 = vadd.f32 %v708_v40, %v673_v38  ;;  %v741_v44 = vadd.f32 %v709_v42, %v674_v41  ;;  %v675_v45 = vld [vmem:[%s2449_s27 + $0x78] sm:$0xff]  ;;  %v676_v47 = vld [vmem:[%s2449_s27 + $0x80] sm:$0xff]  ;;  %p1679_p0 = por %p1678_p12, %p1677_p11 }
 0x294   : > { %767 = vst [vmem:[%s2700_s5 + $0x40] sm:$0xff] %v735_v26  ;;  %768 = vst [vmem:[%s2700_s5 + $0x48] sm:$0xff] %v736_v30  ;;  %v742_v48 = vadd.f32 %v710_v46, %v675_v45  ;;  %v677_v50 = vld [vmem:[%s2449_s27 + $0x88] sm:$0xff]  ;;  %v743_v52 = vadd.f32 %v711_v49, %v676_v47  ;;  %v678_v54 = vld [vmem:[%s2449_s27 + $0x90] sm:$0xff]  ;;  %p1673_p10 = pneg %p1672_p8 }
 0x295   : > { %769 = vst [vmem:[%s2700_s5 + $0x50] sm:$0xff] %v737_v34  ;;  %770 = vst [vmem:[%s2700_s5 + $0x58] sm:$0xff] %v738_v35  ;;  %v744_v53 = vadd.f32 %v712_v51, %v677_v50  ;;  %v679_v56 = vld [vmem:[%s2449_s27 + $0x98] sm:$0xff]  ;;  %v745_v57 = vadd.f32 %v713_v55, %v678_v54  ;;  %v680_v59 = vld [vmem:[%s2449_s27 + $0xa0] sm:$0xff] }
 0x296   : > { %771 = vst [vmem:[%s2700_s5 + $0x60] sm:$0xff] %v739_v39  ;;  %772 = vst [vmem:[%s2700_s5 + $0x68] sm:$0xff] %v740_v43  ;;  %v746_v61 = vadd.f32 %v714_v58, %v679_v56  ;;  %v747_v62 = vadd.f32 %v715_v60, %v680_v59  ;;  %v681_v63 = vld [vmem:[%s2449_s27 + $0xa8] sm:$0xff]  ;;  %v682_v1 = vld [vmem:[%s2449_s27 + $0xb0] sm:$0xff]  ;;  %p1680_p1 = pnand %p1679_p0, %p1673_p10 }
 0x297   : > { %773 = vst [vmem:[%s2700_s5 + $0x70] sm:$0xff] %v741_v44  ;;  %774 = vst [vmem:[%s2700_s5 + $0x78] sm:$0xff] %v742_v48  ;;  %v716_v0 = vld [vmem:[%s2441_s11 + $0xa8] sm:$0xff]  ;;  %v717_v3 = vld [vmem:[%s2441_s11 + $0xb0] sm:$0xff] }
 0x298   : > { %775 = vst [vmem:[%s2700_s5 + $0x80] sm:$0xff] %v743_v52  ;;  %776 = vst [vmem:[%s2700_s5 + $0x88] sm:$0xff] %v744_v53  ;;  %v748_v2 = vadd.f32 %v716_v0, %v681_v63  ;;  %v683_v4 = vld [vmem:[%s2449_s27 + $0xb8] sm:$0xff]  ;;  %v749_v6 = vadd.f32 %v717_v3, %v682_v1  ;;  %v684_v8 = vld [vmem:[%s2449_s27 + $0xc0] sm:$0xff] }
 0x299   : > { %777 = vst [vmem:[%s2700_s5 + $0x90] sm:$0xff] %v745_v57  ;;  %v718_v5 = vld [vmem:[%s2441_s11 + $0xb8] sm:$0xff]  ;;  %778 = vst [vmem:[%s2700_s5 + $0x98] sm:$0xff] %v746_v61  ;;  %v719_v9 = vld [vmem:[%s2441_s11 + $0xc0] sm:$0xff] }
 0x29a   : > { %779 = vst [vmem:[%s2700_s5 + $0xa0] sm:$0xff] %v747_v62  ;;  %v750_v7 = vadd.f32 %v718_v5, %v683_v4  ;;  %v685_v10 = vld [vmem:[%s2449_s27 + $0xc8] sm:$0xff]  ;;  %780 = vst [vmem:[%s2700_s5 + $0xa8] sm:$0xff] %v748_v2  ;;  %v751_v11 = vadd.f32 %v719_v9, %v684_v8  ;;  %v686_v13 = vld [vmem:[%s2449_s27 + $0xd0] sm:$0xff] }
 0x29b   : > { %v720_v12 = vld [vmem:[%s2441_s11 + $0xc8] sm:$0xff]  ;;  %v721_v14 = vld [vmem:[%s2441_s11 + $0xd0] sm:$0xff]  ;;  %781 = vst [vmem:[%s2700_s5 + $0xb0] sm:$0xff] %v749_v6  ;;  %v687_v17 = vld [vmem:[%s2449_s27 + $0xd8] sm:$0xff] }
 0x29c   : > { %782 = vst [vmem:[%s2700_s5 + $0xb8] sm:$0xff] %v750_v7  ;;  %v752_v15 = vadd.f32 %v720_v12, %v685_v10  ;;  %v753_v16 = vadd.f32 %v721_v14, %v686_v13  ;;  %v722_v18 = vld [vmem:[%s2441_s11 + $0xd8] sm:$0xff]  ;;  %v688_v19 = vld [vmem:[%s2449_s27 + $0xe0] sm:$0xff]  ;;  %783 = vst [vmem:[%s2700_s5 + $0xc0] sm:$0xff] %v751_v11 }
 0x29d   : > { %v754_v20 = vadd.f32 %v722_v18, %v687_v17  ;;  %v723_v21 = vld [vmem:[%s2441_s11 + $0xe0] sm:$0xff]  ;;  %v689_v22 = vld [vmem:[%s2449_s27 + $0xe8] sm:$0xff]  ;;  %v690_v26 = vld [vmem:[%s2449_s27 + $0xf0] sm:$0xff] }
 0x29e   : > { %v724_v23 = vld [vmem:[%s2441_s11 + $0xe8] sm:$0xff]  ;;  %784 = vst [vmem:[%s2700_s5 + $0xc8] sm:$0xff] %v752_v15  ;;  %785 = vst [vmem:[%s2700_s5 + $0xd0] sm:$0xff] %v753_v16  ;;  %v755_v24 = vadd.f32 %v723_v21, %v688_v19  ;;  %v725_v27 = vld [vmem:[%s2441_s11 + $0xf0] sm:$0xff] }
 0x29f   : > { %v756_v25 = vadd.f32 %v724_v23, %v689_v22  ;;  %v691_v28 = vld [vmem:[%s2449_s27 + $0xf8] sm:$0xff]  ;;  %786 = vst [vmem:[%s2700_s5 + $0xd8] sm:$0xff] %v754_v20  ;;  %v757_v29 = vadd.f32 %v725_v27, %v690_v26 }
 0x2a0   : > { %v726_v30 = vld [vmem:[%s2441_s11 + $0xf8] sm:$0xff]  ;;  %787 = vst [vmem:[%s2700_s5 + $0xe0] sm:$0xff] %v755_v24 }
 0x2a1   : > { %788 = vst [vmem:[%s2700_s5 + $0xe8] sm:$0xff] %v756_v25  ;;  %v758_v31 = vadd.f32 %v726_v30, %v691_v28  ;;  %789 = vst [vmem:[%s2700_s5 + $0xf0] sm:$0xff] %v757_v29 }
 0x2a3   : > { %790 = vst [vmem:[%s2700_s5 + $0xf8] sm:$0xff] %v758_v31 }
 0x2a4   : > { %1683 = shalt.err (!%p1680_p1)
}
 0x2a5   : > { %s1684_s30 = scalar_lea.hbm %s2550_s20, 4096  ;;  %s1688_s9 = scalar_lea.hbm %s2704_s19, 16384 }
 0x2a6   : > { %p1685_p2 = scmp.ne.s32.totalorder %s2550_s20, %s1684_s30  ;;  %p1689_p7 = scmp.lt.s32.totalorder %s2550_s20, %s2704_s19 }
 0x2a7   : > { %p1690_p9 = scmp.lt.s32.totalorder %s1688_s9, %s1684_s30 }
 0x2a8   : > { %p1686_p3 = pnand %p1685_p2, %p1893_p13 }
 0x2a9   : > { %p1691_p6 = por %p1690_p9, %p1689_p7 }
 0x2aa   : > { %p1687_p5 = pneg %p1686_p3 }
 0x2ac   : > { %p1692_p8 = pnand %p1691_p6, %p1687_p5 }
 0x2ae   : > { %1695 = shalt.err (!%p1692_p8)
}
 0x2af   : > { %s1808_s28 = smov 256   ;;  %s1809_s21 = smov 16  }
 0x2b0   : > { %1156 = dma.vmem_to_hbm [thread:$0]  (%p1893_p13), %s2543_s17, 4096, %s2550_s20, %s2556_s14, %s1808_s28, %s1808_s28, %s1809_s21  }
 0x2b1 PF: > { %s2706_s8 = sld [smem:[#allocation38_spill]] }
 0x2b2   : > { %s2707_s11 = sld [smem:[#allocation31_spill]] }
 0x2b7   : > { %p1168_p10 = scmp.ge.s32.totalorder %s2706_s8, 2 }
 0x2b8   : > { %s823_s5 = sand.u32 1, %s2707_s11  }
 0x2b9   : > { %p1163_p11 = pnand %p1168_p10, %p1902_p4  ;;  %s824_s24 = scalar_lea.sflag [#allocation9], %s823_s5 }
 0x2bb   : > { %p1164_p12 = pneg %p1163_p11 }
 0x2bd   : > { %1749 = dma.done.wait (%p1164_p12), %s824_s24, 4096  }
 0x2be   : > { %1751 = vsyncadd (%p1164_p12), %s824_s24, 4294963200  ;;  %s28_s30 = sadd.s32 1, %s2706_s8   ;;  %s2709_s1 = sld [smem:[#allocation32_spill]] }
 0x2bf   : > { %p25_p0 = scmp.ge.s32.totalorder %s28_s30, 6   ;;  %s2710_s24 = sld [smem:[#allocation33_spill]] }
 0x2c0   : > { %s2711_s25 = sld [smem:[#allocation43_spill]] }
 0x2c1   : > { %s2712_s26 = sld [smem:[#allocation36_spill]]  ;;  %27 = sbr.rel (!%p25_p0) target bundleno = 32 (0x20), region = 160 }
 0x2c2   : > { %s2713_s27 = sld [smem:[#allocation37_spill]] }
 0x2c3   : > { %s2714_s28 = sld [smem:[#allocation39_spill]] }
 0x2c4   : > { %s2715_s29 = sld [smem:[#allocation41_spill]] }
 0x2c6   :  { %829 = vsyncpa [#allocation8], 1 }
 0x2c7   :  { %831 = vsyncpa [#allocation8 + $0x1], 1 }
 0x2c8   :  { %832 = vsyncpa [#allocation9], 1 }
 0x2c9   :  { %834 = vsyncpa [#allocation9 + $0x1], 1 }
 0x2ca   :  { %835 = vsyncmov [#allocation3] }
 0x2cd   :  { %s836_s13 = vpop.sfrf %835 }
 0x2ce   :  { %p1145_p13 = scmp.ne.s32.totalorder %s836_s13, 0 }
 0x2d0   :  { %840 = shalt.err (%p1145_p13)  }
 0x2d1   :  { %842 = vsyncmov [#allocation3 + $0x1] }
 0x2d4   :  { %s843_s15 = vpop.sfrf %842 }
 0x2d5   :  { %p1146_p4 = scmp.ne.s32.totalorder %s843_s15, 0 }
 0x2d7   :  { %847 = shalt.err (%p1146_p4)  }

</bundles_post_ra>
